<compile_context>
chip_gen: v5e
topology: v5e:2x2
jax: 0.10.0
libtpu: 0.0.40
codegen_flags: <defaults>
</compile_context>

<pallas_src>
import functools

import jax
import jax.numpy as jnp
from jax.experimental import pallas as pl
from jax.experimental.pallas import tpu as pltpu  # noqa: F401  (memory spaces unused at toy shapes)


# ------------------------------ fused kernel ---------------------------------
def _fused_lstm_fc_kernel(T, B, L, H, x_ref, *args):
    """Fused multi-layer LSTM + final Linear.

    x_ref      : (T*B, D)     time-major flattened, batch padded to sublane mult.
    per layer  : w_ih (Din, 4H), w_hh (H, 4H), b (1, 4H)   gate order [i, f, g, o]
    wfc_ref    : (H, O_pad)
    bfc_ref    : (1, O_pad)
    out_ref    : (B, O_pad)
    """
    layer_refs = args[: 3 * L]
    wfc_ref, bfc_ref, out_ref = args[3 * L:]

    seq = x_ref[...]  # (T*B, Din) current layer's input sequence (vreg/VMEM value)
    h = None
    for layer in range(L):
        wih = layer_refs[3 * layer + 0][...]   # (Din, 4H)
        whh = layer_refs[3 * layer + 1][...]   # (H, 4H)
        bias = layer_refs[3 * layer + 2][...]  # (1, 4H)
        last_layer = layer == L - 1

        # Hoisted input projection: one (T*B, Din) x (Din, 4H) MXU matmul per layer.
        gin = jnp.dot(seq, wih, preferred_element_type=jnp.float32) + bias  # (T*B, 4H)

        # h / c live in vregs; time loop fully unrolled (T is small and static).
        # TODO(synk): at large T switch to lax.fori_loop(..., unroll=4/8) carrying (h, c).
        h = jnp.zeros((B, H), jnp.float32)
        c = jnp.zeros((B, H), jnp.float32)
        h_steps = []
        for t in range(T):
            r0 = t * B  # static, multiple of 8 (B is sublane-padded) -> aligned slice
            # One full-lane-width matmul per step on the serial recurrence.
            pre = gin[r0:r0 + B, :] + jnp.dot(h, whh, preferred_element_type=jnp.float32)  # (B, 4H)

            i_g = jax.nn.sigmoid(pre[:, 0 * H:1 * H])
            f_g = jax.nn.sigmoid(pre[:, 1 * H:2 * H])
            g_g = jnp.tanh(pre[:, 2 * H:3 * H])
            o_g = jax.nn.sigmoid(pre[:, 3 * H:4 * H])

            c = f_g * c + i_g * g_g
            h = o_g * jnp.tanh(c)

            if not last_layer:
                h_steps.append(h)

        if not last_layer:
            # Next layer's input sequence stays entirely in vregs (~T*B*H*4 bytes).
            seq = jnp.concatenate(h_steps, axis=0)  # (T*B, H)

    # Fused FC on the last timestep of the last layer: out = h_T @ W_fc^T + b_fc.
    out_ref[...] = (
        jnp.dot(h, wfc_ref[...], preferred_element_type=jnp.float32) + bfc_ref[...]
    ).astype(out_ref.dtype)


def _full_spec(shape):
    zeros = (0,) * len(shape)
    return pl.BlockSpec(shape, lambda zeros=zeros: zeros)


@jax.jit
def lstm_model_forward(params, x_btd):
    """Equivalent of LSTMModel.forward: x (B, T, D) -> (B, output_dim)."""
    B, T, D = x_btd.shape
    L = len(params["lstm"])
    H = params["lstm"][0]["w_hh"].shape[0]
    O = params["fc_w_t"].shape[1]

    # Pad batch to a full sublane group and output dim to a full lane group so all
    # in-kernel slices/stores are tile-aligned and unmasked; crop outside.
    B_pad = max(8, ((B + 7) // 8) * 8)
    O_pad = max(128, ((O + 127) // 128) * 128)

    # Time-major, batch-padded, flattened: row t*B_pad + b == (t, b).
    x_tbd = jnp.transpose(x_btd, (1, 0, 2))
    if B_pad != B:
        x_tbd = jnp.pad(x_tbd, ((0, 0), (0, B_pad - B), (0, 0)))
    x_flat = x_tbd.reshape(T * B_pad, D)
    # TODO(synk): fold this relayout into the kernel / BlockSpec to skip one XLA pass.

    wfc = params["fc_w_t"]
    bfc = params["fc_b"]
    if O_pad != O:
        wfc = jnp.pad(wfc, ((0, 0), (0, O_pad - O)))
        bfc = jnp.pad(bfc, ((0, 0), (0, O_pad - O)))

    layer_args = []
    for lp in params["lstm"]:
        layer_args += [lp["w_ih"], lp["w_hh"], lp["b"]]
    args = [x_flat] + layer_args + [wfc, bfc]

    kernel = functools.partial(_fused_lstm_fc_kernel, T, B_pad, L, H)
    out = pl.pallas_call(
        kernel,
        out_shape=jax.ShapeDtypeStruct((B_pad, O_pad), jnp.float32),
        in_specs=[_full_spec(a.shape) for a in args],
        out_specs=_full_spec((B_pad, O_pad)),
    )(*args)
    # TODO(synk): at realistic B/T/H add a "parallel" batch grid axis (v7x megacore),
    # cast matmul operands to bf16 (keep f32 accumulation / elementwise), and chunk
    # the hoisted gin over time if it would exceed VMEM (64 MiB on v7x).
    return out[:B, :O]


# ------------------------------ parameters -----------------------------------
def init_params(key, input_dim, hidden_dim, layer_dim, output_dim):
    """nn.LSTM / nn.Linear-shaped params, packed per layer with gate order [i,f,g,o]."""
    H = hidden_dim
    scale = 1.0 / jnp.sqrt(hidden_dim)
    params = {"lstm": []}
    for layer in range(layer_dim):
        d_in = input_dim if layer == 0 else hidden_dim
        key, k1, k2, k3, k4 = jax.random.split(key, 5)
        w_ih = jax.random.uniform(k1, (4 * H, d_in), jnp.float32, -scale, scale)
        w_hh = jax.random.uniform(k2, (4 * H, H), jnp.float32, -scale, scale)
        b_ih = jax.random.uniform(k3, (4 * H,), jnp.float32, -scale, scale)
        b_hh = jax.random.uniform(k4, (4 * H,), jnp.float32, -scale, scale)
        params["lstm"].append(
            {
                "w_ih": w_ih.T,                           # (d_in, 4H)
                "w_hh": w_hh.T,                           # (H, 4H)
                "b": (b_ih + b_hh).reshape(1, 4 * H),     # (1, 4H)
            }
        )
    key, k5, k6 = jax.random.split(key, 3)
    w_fc = jax.random.uniform(k5, (output_dim, H), jnp.float32, -scale, scale)
    b_fc = jax.random.uniform(k6, (output_dim,), jnp.float32, -scale, scale)
    params["fc_w_t"] = w_fc.T                   # (H, O)
    params["fc_b"] = b_fc.reshape(1, output_dim)
    return params


# ---------------------------- pure-JAX reference ------------------------------
def reference_forward(params, x_btd):
    B = x_btd.shape[0]
    h_seq = jnp.transpose(x_btd, (1, 0, 2))  # (T, B, D)
    for lp in params["lstm"]:
        H = lp["w_hh"].shape[0]
        w_ih_t, w_hh_t, bias = lp["w_ih"], lp["w_hh"], lp["b"]

        def step(carry, x_t, w_ih_t=w_ih_t, w_hh_t=w_hh_t, bias=bias, H=H):
            h_prev, c_prev = carry
            gates = x_t @ w_ih_t + h_prev @ w_hh_t + bias
            i = jax.nn.sigmoid(gates[:, 0 * H:1 * H])
            f = jax.nn.sigmoid(gates[:, 1 * H:2 * H])
            g = jnp.tanh(gates[:, 2 * H:3 * H])
            o = jax.nn.sigmoid(gates[:, 3 * H:4 * H])
            c = f * c_prev + i * g
            hh = o * jnp.tanh(c)
            return (hh, c), hh

        init = (jnp.zeros((B, H), jnp.float32), jnp.zeros((B, H), jnp.float32))
        _, h_seq = jax.lax.scan(step, init, h_seq)
    return h_seq[-1] @ params["fc_w_t"] + params["fc_b"]


if __name__ == "__main__":
    # Small shapes implied by the module: batch=2, seq=8, input_dim=16,
    # hidden_dim=32, layer_dim=2, output_dim=4.
    B, T, D, H, L, O = 2, 8, 16, 32, 2, 4

    key = jax.random.PRNGKey(0)
    key, pkey, xkey = jax.random.split(key, 3)
    params = init_params(pkey, D, H, L, O)
    x = jax.random.normal(xkey, (B, T, D), jnp.float32)

    out = jax.block_until_ready(lstm_model_forward(params, x))
    ref = reference_forward(params, x)

    assert out.shape == (B, O)
    assert jnp.allclose(out, ref, atol=1e-5, rtol=1e-5), (out, ref)

    print("KERNEL_OK")
</pallas_src>

<mosaic_0001>
module attributes {stable_mosaic.version = 11 : i64} {
  func.func @_fused_lstm_fc_kernel(%arg0: memref<64x16xf32, #tpu.memory_space<vmem>>, %arg1: memref<16x128xf32, #tpu.memory_space<vmem>>, %arg2: memref<32x128xf32, #tpu.memory_space<vmem>>, %arg3: memref<1x128xf32, #tpu.memory_space<vmem>>, %arg4: memref<32x128xf32, #tpu.memory_space<vmem>>, %arg5: memref<32x128xf32, #tpu.memory_space<vmem>>, %arg6: memref<1x128xf32, #tpu.memory_space<vmem>>, %arg7: memref<32x128xf32, #tpu.memory_space<vmem>>, %arg8: memref<1x128xf32, #tpu.memory_space<vmem>>, %arg9: memref<8x128xf32, #tpu.memory_space<vmem>>) attributes {dimension_semantics = [], scalar_prefetch = 0 : i64, scratch_operands = 0 : i64, tpu.core_type = #tpu.core_type<tc>} {
    %c0 = arith.constant 0 : index
    %c0_0 = arith.constant 0 : index
    %0 = vector.load %arg0[%c0, %c0_0] : memref<64x16xf32, #tpu.memory_space<vmem>>, vector<64x16xf32>
    %c0_1 = arith.constant 0 : index
    %c0_2 = arith.constant 0 : index
    %1 = vector.load %arg1[%c0_1, %c0_2] : memref<16x128xf32, #tpu.memory_space<vmem>>, vector<16x128xf32>
    %c0_3 = arith.constant 0 : index
    %c0_4 = arith.constant 0 : index
    %2 = vector.load %arg2[%c0_3, %c0_4] : memref<32x128xf32, #tpu.memory_space<vmem>>, vector<32x128xf32>
    %c0_5 = arith.constant 0 : index
    %c0_6 = arith.constant 0 : index
    %3 = vector.load %arg3[%c0_5, %c0_6] : memref<1x128xf32, #tpu.memory_space<vmem>>, vector<1x128xf32>
    %cst = arith.constant dense<0.000000e+00> : vector<64x128xf32>
    %4 = tpu.matmul %0, %1, %cst {dimension_numbers = #tpu.dot_dimension_numbers<[1], [0], [0], [1], [0, 0, 1, 1], [], []>} : vector<64x16xf32>, vector<16x128xf32>, vector<64x128xf32> -> vector<64x128xf32>
    %5 = vector.broadcast %3 : vector<1x128xf32> to vector<64x128xf32>
    %6 = arith.addf %4, %5 : vector<64x128xf32>
    %cst_7 = arith.constant 0.000000e+00 : f32
    %7 = vector.broadcast %cst_7 : f32 to vector<8x32xf32>
    %cst_8 = arith.constant 0.000000e+00 : f32
    %8 = vector.broadcast %cst_8 : f32 to vector<8x32xf32>
    %9 = vector.extract_strided_slice %6 {offsets = [0, 0], sizes = [8, 128], strides = [1, 1]} : vector<64x128xf32> to vector<8x128xf32>
    %cst_9 = arith.constant dense<0.000000e+00> : vector<8x128xf32>
    %10 = tpu.matmul %7, %2, %cst_9 {dimension_numbers = #tpu.dot_dimension_numbers<[1], [0], [0], [1], [0, 0, 1, 1], [], []>} : vector<8x32xf32>, vector<32x128xf32>, vector<8x128xf32> -> vector<8x128xf32>
    %11 = arith.addf %9, %10 : vector<8x128xf32>
    %12 = vector.extract_strided_slice %11 {offsets = [0, 0], sizes = [8, 32], strides = [1, 1]} : vector<8x128xf32> to vector<8x32xf32>
    %13 = arith.negf %12 : vector<8x32xf32>
    %14 = math.exp %13 : vector<8x32xf32>
    %cst_10 = arith.constant 1.000000e+00 : f32
    %15 = vector.broadcast %cst_10 : f32 to vector<8x32xf32>
    %16 = arith.addf %15, %14 : vector<8x32xf32>
    %17 = arith.divf %15, %16 : vector<8x32xf32>
    %18 = vector.extract_strided_slice %11 {offsets = [0, 32], sizes = [8, 32], strides = [1, 1]} : vector<8x128xf32> to vector<8x32xf32>
    %19 = arith.negf %18 : vector<8x32xf32>
    %20 = math.exp %19 : vector<8x32xf32>
    %cst_11 = arith.constant 1.000000e+00 : f32
    %21 = vector.broadcast %cst_11 : f32 to vector<8x32xf32>
    %22 = arith.addf %21, %20 : vector<8x32xf32>
    %23 = arith.divf %21, %22 : vector<8x32xf32>
    %24 = vector.extract_strided_slice %11 {offsets = [0, 64], sizes = [8, 32], strides = [1, 1]} : vector<8x128xf32> to vector<8x32xf32>
    %25 = math.tanh %24 : vector<8x32xf32>
    %26 = vector.extract_strided_slice %11 {offsets = [0, 96], sizes = [8, 32], strides = [1, 1]} : vector<8x128xf32> to vector<8x32xf32>
    %27 = arith.negf %26 : vector<8x32xf32>
    %28 = math.exp %27 : vector<8x32xf32>
    %cst_12 = arith.constant 1.000000e+00 : f32
    %29 = vector.broadcast %cst_12 : f32 to vector<8x32xf32>
    %30 = arith.addf %29, %28 : vector<8x32xf32>
    %31 = arith.divf %29, %30 : vector<8x32xf32>
    %32 = arith.mulf %23, %8 : vector<8x32xf32>
    %33 = arith.mulf %17, %25 : vector<8x32xf32>
    %34 = arith.addf %32, %33 : vector<8x32xf32>
    %35 = math.tanh %34 : vector<8x32xf32>
    %36 = arith.mulf %31, %35 : vector<8x32xf32>
    %37 = vector.extract_strided_slice %6 {offsets = [8, 0], sizes = [8, 128], strides = [1, 1]} : vector<64x128xf32> to vector<8x128xf32>
    %cst_13 = arith.constant dense<0.000000e+00> : vector<8x128xf32>
    %38 = tpu.matmul %36, %2, %cst_13 {dimension_numbers = #tpu.dot_dimension_numbers<[1], [0], [0], [1], [0, 0, 1, 1], [], []>} : vector<8x32xf32>, vector<32x128xf32>, vector<8x128xf32> -> vector<8x128xf32>
    %39 = arith.addf %37, %38 : vector<8x128xf32>
    %40 = vector.extract_strided_slice %39 {offsets = [0, 0], sizes = [8, 32], strides = [1, 1]} : vector<8x128xf32> to vector<8x32xf32>
    %41 = arith.negf %40 : vector<8x32xf32>
    %42 = math.exp %41 : vector<8x32xf32>
    %cst_14 = arith.constant 1.000000e+00 : f32
    %43 = vector.broadcast %cst_14 : f32 to vector<8x32xf32>
    %44 = arith.addf %43, %42 : vector<8x32xf32>
    %45 = arith.divf %43, %44 : vector<8x32xf32>
    %46 = vector.extract_strided_slice %39 {offsets = [0, 32], sizes = [8, 32], strides = [1, 1]} : vector<8x128xf32> to vector<8x32xf32>
    %47 = arith.negf %46 : vector<8x32xf32>
    %48 = math.exp %47 : vector<8x32xf32>
    %cst_15 = arith.constant 1.000000e+00 : f32
    %49 = vector.broadcast %cst_15 : f32 to vector<8x32xf32>
    %50 = arith.addf %49, %48 : vector<8x32xf32>
    %51 = arith.divf %49, %50 : vector<8x32xf32>
    %52 = vector.extract_strided_slice %39 {offsets = [0, 64], sizes = [8, 32], strides = [1, 1]} : vector<8x128xf32> to vector<8x32xf32>
    %53 = math.tanh %52 : vector<8x32xf32>
    %54 = vector.extract_strided_slice %39 {offsets = [0, 96], sizes = [8, 32], strides = [1, 1]} : vector<8x128xf32> to vector<8x32xf32>
    %55 = arith.negf %54 : vector<8x32xf32>
    %56 = math.exp %55 : vector<8x32xf32>
    %cst_16 = arith.constant 1.000000e+00 : f32
    %57 = vector.broadcast %cst_16 : f32 to vector<8x32xf32>
    %58 = arith.addf %57, %56 : vector<8x32xf32>
    %59 = arith.divf %57, %58 : vector<8x32xf32>
    %60 = arith.mulf %51, %34 : vector<8x32xf32>
    %61 = arith.mulf %45, %53 : vector<8x32xf32>
    %62 = arith.addf %60, %61 : vector<8x32xf32>
    %63 = math.tanh %62 : vector<8x32xf32>
    %64 = arith.mulf %59, %63 : vector<8x32xf32>
    %65 = vector.extract_strided_slice %6 {offsets = [16, 0], sizes = [8, 128], strides = [1, 1]} : vector<64x128xf32> to vector<8x128xf32>
    %cst_17 = arith.constant dense<0.000000e+00> : vector<8x128xf32>
    %66 = tpu.matmul %64, %2, %cst_17 {dimension_numbers = #tpu.dot_dimension_numbers<[1], [0], [0], [1], [0, 0, 1, 1], [], []>} : vector<8x32xf32>, vector<32x128xf32>, vector<8x128xf32> -> vector<8x128xf32>
    %67 = arith.addf %65, %66 : vector<8x128xf32>
    %68 = vector.extract_strided_slice %67 {offsets = [0, 0], sizes = [8, 32], strides = [1, 1]} : vector<8x128xf32> to vector<8x32xf32>
    %69 = arith.negf %68 : vector<8x32xf32>
    %70 = math.exp %69 : vector<8x32xf32>
    %cst_18 = arith.constant 1.000000e+00 : f32
    %71 = vector.broadcast %cst_18 : f32 to vector<8x32xf32>
    %72 = arith.addf %71, %70 : vector<8x32xf32>
    %73 = arith.divf %71, %72 : vector<8x32xf32>
    %74 = vector.extract_strided_slice %67 {offsets = [0, 32], sizes = [8, 32], strides = [1, 1]} : vector<8x128xf32> to vector<8x32xf32>
    %75 = arith.negf %74 : vector<8x32xf32>
    %76 = math.exp %75 : vector<8x32xf32>
    %cst_19 = arith.constant 1.000000e+00 : f32
    %77 = vector.broadcast %cst_19 : f32 to vector<8x32xf32>
    %78 = arith.addf %77, %76 : vector<8x32xf32>
    %79 = arith.divf %77, %78 : vector<8x32xf32>
    %80 = vector.extract_strided_slice %67 {offsets = [0, 64], sizes = [8, 32], strides = [1, 1]} : vector<8x128xf32> to vector<8x32xf32>
    %81 = math.tanh %80 : vector<8x32xf32>
    %82 = vector.extract_strided_slice %67 {offsets = [0, 96], sizes = [8, 32], strides = [1, 1]} : vector<8x128xf32> to vector<8x32xf32>
    %83 = arith.negf %82 : vector<8x32xf32>
    %84 = math.exp %83 : vector<8x32xf32>
    %cst_20 = arith.constant 1.000000e+00 : f32
    %85 = vector.broadcast %cst_20 : f32 to vector<8x32xf32>
    %86 = arith.addf %85, %84 : vector<8x32xf32>
    %87 = arith.divf %85, %86 : vector<8x32xf32>
    %88 = arith.mulf %79, %62 : vector<8x32xf32>
    %89 = arith.mulf %73, %81 : vector<8x32xf32>
    %90 = arith.addf %88, %89 : vector<8x32xf32>
    %91 = math.tanh %90 : vector<8x32xf32>
    %92 = arith.mulf %87, %91 : vector<8x32xf32>
    %93 = vector.extract_strided_slice %6 {offsets = [24, 0], sizes = [8, 128], strides = [1, 1]} : vector<64x128xf32> to vector<8x128xf32>
    %cst_21 = arith.constant dense<0.000000e+00> : vector<8x128xf32>
    %94 = tpu.matmul %92, %2, %cst_21 {dimension_numbers = #tpu.dot_dimension_numbers<[1], [0], [0], [1], [0, 0, 1, 1], [], []>} : vector<8x32xf32>, vector<32x128xf32>, vector<8x128xf32> -> vector<8x128xf32>
    %95 = arith.addf %93, %94 : vector<8x128xf32>
    %96 = vector.extract_strided_slice %95 {offsets = [0, 0], sizes = [8, 32], strides = [1, 1]} : vector<8x128xf32> to vector<8x32xf32>
    %97 = arith.negf %96 : vector<8x32xf32>
    %98 = math.exp %97 : vector<8x32xf32>
    %cst_22 = arith.constant 1.000000e+00 : f32
    %99 = vector.broadcast %cst_22 : f32 to vector<8x32xf32>
    %100 = arith.addf %99, %98 : vector<8x32xf32>
    %101 = arith.divf %99, %100 : vector<8x32xf32>
    %102 = vector.extract_strided_slice %95 {offsets = [0, 32], sizes = [8, 32], strides = [1, 1]} : vector<8x128xf32> to vector<8x32xf32>
    %103 = arith.negf %102 : vector<8x32xf32>
    %104 = math.exp %103 : vector<8x32xf32>
    %cst_23 = arith.constant 1.000000e+00 : f32
    %105 = vector.broadcast %cst_23 : f32 to vector<8x32xf32>
    %106 = arith.addf %105, %104 : vector<8x32xf32>
    %107 = arith.divf %105, %106 : vector<8x32xf32>
    %108 = vector.extract_strided_slice %95 {offsets = [0, 64], sizes = [8, 32], strides = [1, 1]} : vector<8x128xf32> to vector<8x32xf32>
    %109 = math.tanh %108 : vector<8x32xf32>
    %110 = vector.extract_strided_slice %95 {offsets = [0, 96], sizes = [8, 32], strides = [1, 1]} : vector<8x128xf32> to vector<8x32xf32>
    %111 = arith.negf %110 : vector<8x32xf32>
    %112 = math.exp %111 : vector<8x32xf32>
    %cst_24 = arith.constant 1.000000e+00 : f32
    %113 = vector.broadcast %cst_24 : f32 to vector<8x32xf32>
    %114 = arith.addf %113, %112 : vector<8x32xf32>
    %115 = arith.divf %113, %114 : vector<8x32xf32>
    %116 = arith.mulf %107, %90 : vector<8x32xf32>
    %117 = arith.mulf %101, %109 : vector<8x32xf32>
    %118 = arith.addf %116, %117 : vector<8x32xf32>
    %119 = math.tanh %118 : vector<8x32xf32>
    %120 = arith.mulf %115, %119 : vector<8x32xf32>
    %121 = vector.extract_strided_slice %6 {offsets = [32, 0], sizes = [8, 128], strides = [1, 1]} : vector<64x128xf32> to vector<8x128xf32>
    %cst_25 = arith.constant dense<0.000000e+00> : vector<8x128xf32>
    %122 = tpu.matmul %120, %2, %cst_25 {dimension_numbers = #tpu.dot_dimension_numbers<[1], [0], [0], [1], [0, 0, 1, 1], [], []>} : vector<8x32xf32>, vector<32x128xf32>, vector<8x128xf32> -> vector<8x128xf32>
    %123 = arith.addf %121, %122 : vector<8x128xf32>
    %124 = vector.extract_strided_slice %123 {offsets = [0, 0], sizes = [8, 32], strides = [1, 1]} : vector<8x128xf32> to vector<8x32xf32>
    %125 = arith.negf %124 : vector<8x32xf32>
    %126 = math.exp %125 : vector<8x32xf32>
    %cst_26 = arith.constant 1.000000e+00 : f32
    %127 = vector.broadcast %cst_26 : f32 to vector<8x32xf32>
    %128 = arith.addf %127, %126 : vector<8x32xf32>
    %129 = arith.divf %127, %128 : vector<8x32xf32>
    %130 = vector.extract_strided_slice %123 {offsets = [0, 32], sizes = [8, 32], strides = [1, 1]} : vector<8x128xf32> to vector<8x32xf32>
    %131 = arith.negf %130 : vector<8x32xf32>
    %132 = math.exp %131 : vector<8x32xf32>
    %cst_27 = arith.constant 1.000000e+00 : f32
    %133 = vector.broadcast %cst_27 : f32 to vector<8x32xf32>
    %134 = arith.addf %133, %132 : vector<8x32xf32>
    %135 = arith.divf %133, %134 : vector<8x32xf32>
    %136 = vector.extract_strided_slice %123 {offsets = [0, 64], sizes = [8, 32], strides = [1, 1]} : vector<8x128xf32> to vector<8x32xf32>
    %137 = math.tanh %136 : vector<8x32xf32>
    %138 = vector.extract_strided_slice %123 {offsets = [0, 96], sizes = [8, 32], strides = [1, 1]} : vector<8x128xf32> to vector<8x32xf32>
    %139 = arith.negf %138 : vector<8x32xf32>
    %140 = math.exp %139 : vector<8x32xf32>
    %cst_28 = arith.constant 1.000000e+00 : f32
    %141 = vector.broadcast %cst_28 : f32 to vector<8x32xf32>
    %142 = arith.addf %141, %140 : vector<8x32xf32>
    %143 = arith.divf %141, %142 : vector<8x32xf32>
    %144 = arith.mulf %135, %118 : vector<8x32xf32>
    %145 = arith.mulf %129, %137 : vector<8x32xf32>
    %146 = arith.addf %144, %145 : vector<8x32xf32>
    %147 = math.tanh %146 : vector<8x32xf32>
    %148 = arith.mulf %143, %147 : vector<8x32xf32>
    %149 = vector.extract_strided_slice %6 {offsets = [40, 0], sizes = [8, 128], strides = [1, 1]} : vector<64x128xf32> to vector<8x128xf32>
    %cst_29 = arith.constant dense<0.000000e+00> : vector<8x128xf32>
    %150 = tpu.matmul %148, %2, %cst_29 {dimension_numbers = #tpu.dot_dimension_numbers<[1], [0], [0], [1], [0, 0, 1, 1], [], []>} : vector<8x32xf32>, vector<32x128xf32>, vector<8x128xf32> -> vector<8x128xf32>
    %151 = arith.addf %149, %150 : vector<8x128xf32>
    %152 = vector.extract_strided_slice %151 {offsets = [0, 0], sizes = [8, 32], strides = [1, 1]} : vector<8x128xf32> to vector<8x32xf32>
    %153 = arith.negf %152 : vector<8x32xf32>
    %154 = math.exp %153 : vector<8x32xf32>
    %cst_30 = arith.constant 1.000000e+00 : f32
    %155 = vector.broadcast %cst_30 : f32 to vector<8x32xf32>
    %156 = arith.addf %155, %154 : vector<8x32xf32>
    %157 = arith.divf %155, %156 : vector<8x32xf32>
    %158 = vector.extract_strided_slice %151 {offsets = [0, 32], sizes = [8, 32], strides = [1, 1]} : vector<8x128xf32> to vector<8x32xf32>
    %159 = arith.negf %158 : vector<8x32xf32>
    %160 = math.exp %159 : vector<8x32xf32>
    %cst_31 = arith.constant 1.000000e+00 : f32
    %161 = vector.broadcast %cst_31 : f32 to vector<8x32xf32>
    %162 = arith.addf %161, %160 : vector<8x32xf32>
    %163 = arith.divf %161, %162 : vector<8x32xf32>
    %164 = vector.extract_strided_slice %151 {offsets = [0, 64], sizes = [8, 32], strides = [1, 1]} : vector<8x128xf32> to vector<8x32xf32>
    %165 = math.tanh %164 : vector<8x32xf32>
    %166 = vector.extract_strided_slice %151 {offsets = [0, 96], sizes = [8, 32], strides = [1, 1]} : vector<8x128xf32> to vector<8x32xf32>
    %167 = arith.negf %166 : vector<8x32xf32>
    %168 = math.exp %167 : vector<8x32xf32>
    %cst_32 = arith.constant 1.000000e+00 : f32
    %169 = vector.broadcast %cst_32 : f32 to vector<8x32xf32>
    %170 = arith.addf %169, %168 : vector<8x32xf32>
    %171 = arith.divf %169, %170 : vector<8x32xf32>
    %172 = arith.mulf %163, %146 : vector<8x32xf32>
    %173 = arith.mulf %157, %165 : vector<8x32xf32>
    %174 = arith.addf %172, %173 : vector<8x32xf32>
    %175 = math.tanh %174 : vector<8x32xf32>
    %176 = arith.mulf %171, %175 : vector<8x32xf32>
    %177 = vector.extract_strided_slice %6 {offsets = [48, 0], sizes = [8, 128], strides = [1, 1]} : vector<64x128xf32> to vector<8x128xf32>
    %cst_33 = arith.constant dense<0.000000e+00> : vector<8x128xf32>
    %178 = tpu.matmul %176, %2, %cst_33 {dimension_numbers = #tpu.dot_dimension_numbers<[1], [0], [0], [1], [0, 0, 1, 1], [], []>} : vector<8x32xf32>, vector<32x128xf32>, vector<8x128xf32> -> vector<8x128xf32>
    %179 = arith.addf %177, %178 : vector<8x128xf32>
    %180 = vector.extract_strided_slice %179 {offsets = [0, 0], sizes = [8, 32], strides = [1, 1]} : vector<8x128xf32> to vector<8x32xf32>
    %181 = arith.negf %180 : vector<8x32xf32>
    %182 = math.exp %181 : vector<8x32xf32>
    %cst_34 = arith.constant 1.000000e+00 : f32
    %183 = vector.broadcast %cst_34 : f32 to vector<8x32xf32>
    %184 = arith.addf %183, %182 : vector<8x32xf32>
    %185 = arith.divf %183, %184 : vector<8x32xf32>
    %186 = vector.extract_strided_slice %179 {offsets = [0, 32], sizes = [8, 32], strides = [1, 1]} : vector<8x128xf32> to vector<8x32xf32>
    %187 = arith.negf %186 : vector<8x32xf32>
    %188 = math.exp %187 : vector<8x32xf32>
    %cst_35 = arith.constant 1.000000e+00 : f32
    %189 = vector.broadcast %cst_35 : f32 to vector<8x32xf32>
    %190 = arith.addf %189, %188 : vector<8x32xf32>
    %191 = arith.divf %189, %190 : vector<8x32xf32>
    %192 = vector.extract_strided_slice %179 {offsets = [0, 64], sizes = [8, 32], strides = [1, 1]} : vector<8x128xf32> to vector<8x32xf32>
    %193 = math.tanh %192 : vector<8x32xf32>
    %194 = vector.extract_strided_slice %179 {offsets = [0, 96], sizes = [8, 32], strides = [1, 1]} : vector<8x128xf32> to vector<8x32xf32>
    %195 = arith.negf %194 : vector<8x32xf32>
    %196 = math.exp %195 : vector<8x32xf32>
    %cst_36 = arith.constant 1.000000e+00 : f32
    %197 = vector.broadcast %cst_36 : f32 to vector<8x32xf32>
    %198 = arith.addf %197, %196 : vector<8x32xf32>
    %199 = arith.divf %197, %198 : vector<8x32xf32>
    %200 = arith.mulf %191, %174 : vector<8x32xf32>
    %201 = arith.mulf %185, %193 : vector<8x32xf32>
    %202 = arith.addf %200, %201 : vector<8x32xf32>
    %203 = math.tanh %202 : vector<8x32xf32>
    %204 = arith.mulf %199, %203 : vector<8x32xf32>
    %205 = vector.extract_strided_slice %6 {offsets = [56, 0], sizes = [8, 128], strides = [1, 1]} : vector<64x128xf32> to vector<8x128xf32>
    %cst_37 = arith.constant dense<0.000000e+00> : vector<8x128xf32>
    %206 = tpu.matmul %204, %2, %cst_37 {dimension_numbers = #tpu.dot_dimension_numbers<[1], [0], [0], [1], [0, 0, 1, 1], [], []>} : vector<8x32xf32>, vector<32x128xf32>, vector<8x128xf32> -> vector<8x128xf32>
    %207 = arith.addf %205, %206 : vector<8x128xf32>
    %208 = vector.extract_strided_slice %207 {offsets = [0, 0], sizes = [8, 32], strides = [1, 1]} : vector<8x128xf32> to vector<8x32xf32>
    %209 = arith.negf %208 : vector<8x32xf32>
    %210 = math.exp %209 : vector<8x32xf32>
    %cst_38 = arith.constant 1.000000e+00 : f32
    %211 = vector.broadcast %cst_38 : f32 to vector<8x32xf32>
    %212 = arith.addf %211, %210 : vector<8x32xf32>
    %213 = arith.divf %211, %212 : vector<8x32xf32>
    %214 = vector.extract_strided_slice %207 {offsets = [0, 32], sizes = [8, 32], strides = [1, 1]} : vector<8x128xf32> to vector<8x32xf32>
    %215 = arith.negf %214 : vector<8x32xf32>
    %216 = math.exp %215 : vector<8x32xf32>
    %cst_39 = arith.constant 1.000000e+00 : f32
    %217 = vector.broadcast %cst_39 : f32 to vector<8x32xf32>
    %218 = arith.addf %217, %216 : vector<8x32xf32>
    %219 = arith.divf %217, %218 : vector<8x32xf32>
    %220 = vector.extract_strided_slice %207 {offsets = [0, 64], sizes = [8, 32], strides = [1, 1]} : vector<8x128xf32> to vector<8x32xf32>
    %221 = math.tanh %220 : vector<8x32xf32>
    %222 = vector.extract_strided_slice %207 {offsets = [0, 96], sizes = [8, 32], strides = [1, 1]} : vector<8x128xf32> to vector<8x32xf32>
    %223 = arith.negf %222 : vector<8x32xf32>
    %224 = math.exp %223 : vector<8x32xf32>
    %cst_40 = arith.constant 1.000000e+00 : f32
    %225 = vector.broadcast %cst_40 : f32 to vector<8x32xf32>
    %226 = arith.addf %225, %224 : vector<8x32xf32>
    %227 = arith.divf %225, %226 : vector<8x32xf32>
    %228 = arith.mulf %219, %202 : vector<8x32xf32>
    %229 = arith.mulf %213, %221 : vector<8x32xf32>
    %230 = arith.addf %228, %229 : vector<8x32xf32>
    %231 = math.tanh %230 : vector<8x32xf32>
    %232 = arith.mulf %227, %231 : vector<8x32xf32>
    %233 = tpu.concatenate %36, %64, %92, %120, %148, %176, %204, %232 in 0 : vector<8x32xf32>, vector<8x32xf32>, vector<8x32xf32>, vector<8x32xf32>, vector<8x32xf32>, vector<8x32xf32>, vector<8x32xf32>, vector<8x32xf32> -> vector<64x32xf32>
    %c0_41 = arith.constant 0 : index
    %c0_42 = arith.constant 0 : index
    %234 = vector.load %arg4[%c0_41, %c0_42] : memref<32x128xf32, #tpu.memory_space<vmem>>, vector<32x128xf32>
    %c0_43 = arith.constant 0 : index
    %c0_44 = arith.constant 0 : index
    %235 = vector.load %arg5[%c0_43, %c0_44] : memref<32x128xf32, #tpu.memory_space<vmem>>, vector<32x128xf32>
    %c0_45 = arith.constant 0 : index
    %c0_46 = arith.constant 0 : index
    %236 = vector.load %arg6[%c0_45, %c0_46] : memref<1x128xf32, #tpu.memory_space<vmem>>, vector<1x128xf32>
    %cst_47 = arith.constant dense<0.000000e+00> : vector<64x128xf32>
    %237 = tpu.matmul %233, %234, %cst_47 {dimension_numbers = #tpu.dot_dimension_numbers<[1], [0], [0], [1], [0, 0, 1, 1], [], []>} : vector<64x32xf32>, vector<32x128xf32>, vector<64x128xf32> -> vector<64x128xf32>
    %238 = vector.broadcast %236 : vector<1x128xf32> to vector<64x128xf32>
    %239 = arith.addf %237, %238 : vector<64x128xf32>
    %cst_48 = arith.constant 0.000000e+00 : f32
    %240 = vector.broadcast %cst_48 : f32 to vector<8x32xf32>
    %cst_49 = arith.constant 0.000000e+00 : f32
    %241 = vector.broadcast %cst_49 : f32 to vector<8x32xf32>
    %242 = vector.extract_strided_slice %239 {offsets = [0, 0], sizes = [8, 128], strides = [1, 1]} : vector<64x128xf32> to vector<8x128xf32>
    %cst_50 = arith.constant dense<0.000000e+00> : vector<8x128xf32>
    %243 = tpu.matmul %240, %235, %cst_50 {dimension_numbers = #tpu.dot_dimension_numbers<[1], [0], [0], [1], [0, 0, 1, 1], [], []>} : vector<8x32xf32>, vector<32x128xf32>, vector<8x128xf32> -> vector<8x128xf32>
    %244 = arith.addf %242, %243 : vector<8x128xf32>
    %245 = vector.extract_strided_slice %244 {offsets = [0, 0], sizes = [8, 32], strides = [1, 1]} : vector<8x128xf32> to vector<8x32xf32>
    %246 = arith.negf %245 : vector<8x32xf32>
    %247 = math.exp %246 : vector<8x32xf32>
    %cst_51 = arith.constant 1.000000e+00 : f32
    %248 = vector.broadcast %cst_51 : f32 to vector<8x32xf32>
    %249 = arith.addf %248, %247 : vector<8x32xf32>
    %250 = arith.divf %248, %249 : vector<8x32xf32>
    %251 = vector.extract_strided_slice %244 {offsets = [0, 32], sizes = [8, 32], strides = [1, 1]} : vector<8x128xf32> to vector<8x32xf32>
    %252 = arith.negf %251 : vector<8x32xf32>
    %253 = math.exp %252 : vector<8x32xf32>
    %cst_52 = arith.constant 1.000000e+00 : f32
    %254 = vector.broadcast %cst_52 : f32 to vector<8x32xf32>
    %255 = arith.addf %254, %253 : vector<8x32xf32>
    %256 = arith.divf %254, %255 : vector<8x32xf32>
    %257 = vector.extract_strided_slice %244 {offsets = [0, 64], sizes = [8, 32], strides = [1, 1]} : vector<8x128xf32> to vector<8x32xf32>
    %258 = math.tanh %257 : vector<8x32xf32>
    %259 = vector.extract_strided_slice %244 {offsets = [0, 96], sizes = [8, 32], strides = [1, 1]} : vector<8x128xf32> to vector<8x32xf32>
    %260 = arith.negf %259 : vector<8x32xf32>
    %261 = math.exp %260 : vector<8x32xf32>
    %cst_53 = arith.constant 1.000000e+00 : f32
    %262 = vector.broadcast %cst_53 : f32 to vector<8x32xf32>
    %263 = arith.addf %262, %261 : vector<8x32xf32>
    %264 = arith.divf %262, %263 : vector<8x32xf32>
    %265 = arith.mulf %256, %241 : vector<8x32xf32>
    %266 = arith.mulf %250, %258 : vector<8x32xf32>
    %267 = arith.addf %265, %266 : vector<8x32xf32>
    %268 = math.tanh %267 : vector<8x32xf32>
    %269 = arith.mulf %264, %268 : vector<8x32xf32>
    %270 = vector.extract_strided_slice %239 {offsets = [8, 0], sizes = [8, 128], strides = [1, 1]} : vector<64x128xf32> to vector<8x128xf32>
    %cst_54 = arith.constant dense<0.000000e+00> : vector<8x128xf32>
    %271 = tpu.matmul %269, %235, %cst_54 {dimension_numbers = #tpu.dot_dimension_numbers<[1], [0], [0], [1], [0, 0, 1, 1], [], []>} : vector<8x32xf32>, vector<32x128xf32>, vector<8x128xf32> -> vector<8x128xf32>
    %272 = arith.addf %270, %271 : vector<8x128xf32>
    %273 = vector.extract_strided_slice %272 {offsets = [0, 0], sizes = [8, 32], strides = [1, 1]} : vector<8x128xf32> to vector<8x32xf32>
    %274 = arith.negf %273 : vector<8x32xf32>
    %275 = math.exp %274 : vector<8x32xf32>
    %cst_55 = arith.constant 1.000000e+00 : f32
    %276 = vector.broadcast %cst_55 : f32 to vector<8x32xf32>
    %277 = arith.addf %276, %275 : vector<8x32xf32>
    %278 = arith.divf %276, %277 : vector<8x32xf32>
    %279 = vector.extract_strided_slice %272 {offsets = [0, 32], sizes = [8, 32], strides = [1, 1]} : vector<8x128xf32> to vector<8x32xf32>
    %280 = arith.negf %279 : vector<8x32xf32>
    %281 = math.exp %280 : vector<8x32xf32>
    %cst_56 = arith.constant 1.000000e+00 : f32
    %282 = vector.broadcast %cst_56 : f32 to vector<8x32xf32>
    %283 = arith.addf %282, %281 : vector<8x32xf32>
    %284 = arith.divf %282, %283 : vector<8x32xf32>
    %285 = vector.extract_strided_slice %272 {offsets = [0, 64], sizes = [8, 32], strides = [1, 1]} : vector<8x128xf32> to vector<8x32xf32>
    %286 = math.tanh %285 : vector<8x32xf32>
    %287 = vector.extract_strided_slice %272 {offsets = [0, 96], sizes = [8, 32], strides = [1, 1]} : vector<8x128xf32> to vector<8x32xf32>
    %288 = arith.negf %287 : vector<8x32xf32>
    %289 = math.exp %288 : vector<8x32xf32>
    %cst_57 = arith.constant 1.000000e+00 : f32
    %290 = vector.broadcast %cst_57 : f32 to vector<8x32xf32>
    %291 = arith.addf %290, %289 : vector<8x32xf32>
    %292 = arith.divf %290, %291 : vector<8x32xf32>
    %293 = arith.mulf %284, %267 : vector<8x32xf32>
    %294 = arith.mulf %278, %286 : vector<8x32xf32>
    %295 = arith.addf %293, %294 : vector<8x32xf32>
    %296 = math.tanh %295 : vector<8x32xf32>
    %297 = arith.mulf %292, %296 : vector<8x32xf32>
    %298 = vector.extract_strided_slice %239 {offsets = [16, 0], sizes = [8, 128], strides = [1, 1]} : vector<64x128xf32> to vector<8x128xf32>
    %cst_58 = arith.constant dense<0.000000e+00> : vector<8x128xf32>
    %299 = tpu.matmul %297, %235, %cst_58 {dimension_numbers = #tpu.dot_dimension_numbers<[1], [0], [0], [1], [0, 0, 1, 1], [], []>} : vector<8x32xf32>, vector<32x128xf32>, vector<8x128xf32> -> vector<8x128xf32>
    %300 = arith.addf %298, %299 : vector<8x128xf32>
    %301 = vector.extract_strided_slice %300 {offsets = [0, 0], sizes = [8, 32], strides = [1, 1]} : vector<8x128xf32> to vector<8x32xf32>
    %302 = arith.negf %301 : vector<8x32xf32>
    %303 = math.exp %302 : vector<8x32xf32>
    %cst_59 = arith.constant 1.000000e+00 : f32
    %304 = vector.broadcast %cst_59 : f32 to vector<8x32xf32>
    %305 = arith.addf %304, %303 : vector<8x32xf32>
    %306 = arith.divf %304, %305 : vector<8x32xf32>
    %307 = vector.extract_strided_slice %300 {offsets = [0, 32], sizes = [8, 32], strides = [1, 1]} : vector<8x128xf32> to vector<8x32xf32>
    %308 = arith.negf %307 : vector<8x32xf32>
    %309 = math.exp %308 : vector<8x32xf32>
    %cst_60 = arith.constant 1.000000e+00 : f32
    %310 = vector.broadcast %cst_60 : f32 to vector<8x32xf32>
    %311 = arith.addf %310, %309 : vector<8x32xf32>
    %312 = arith.divf %310, %311 : vector<8x32xf32>
    %313 = vector.extract_strided_slice %300 {offsets = [0, 64], sizes = [8, 32], strides = [1, 1]} : vector<8x128xf32> to vector<8x32xf32>
    %314 = math.tanh %313 : vector<8x32xf32>
    %315 = vector.extract_strided_slice %300 {offsets = [0, 96], sizes = [8, 32], strides = [1, 1]} : vector<8x128xf32> to vector<8x32xf32>
    %316 = arith.negf %315 : vector<8x32xf32>
    %317 = math.exp %316 : vector<8x32xf32>
    %cst_61 = arith.constant 1.000000e+00 : f32
    %318 = vector.broadcast %cst_61 : f32 to vector<8x32xf32>
    %319 = arith.addf %318, %317 : vector<8x32xf32>
    %320 = arith.divf %318, %319 : vector<8x32xf32>
    %321 = arith.mulf %312, %295 : vector<8x32xf32>
    %322 = arith.mulf %306, %314 : vector<8x32xf32>
    %323 = arith.addf %321, %322 : vector<8x32xf32>
    %324 = math.tanh %323 : vector<8x32xf32>
    %325 = arith.mulf %320, %324 : vector<8x32xf32>
    %326 = vector.extract_strided_slice %239 {offsets = [24, 0], sizes = [8, 128], strides = [1, 1]} : vector<64x128xf32> to vector<8x128xf32>
    %cst_62 = arith.constant dense<0.000000e+00> : vector<8x128xf32>
    %327 = tpu.matmul %325, %235, %cst_62 {dimension_numbers = #tpu.dot_dimension_numbers<[1], [0], [0], [1], [0, 0, 1, 1], [], []>} : vector<8x32xf32>, vector<32x128xf32>, vector<8x128xf32> -> vector<8x128xf32>
    %328 = arith.addf %326, %327 : vector<8x128xf32>
    %329 = vector.extract_strided_slice %328 {offsets = [0, 0], sizes = [8, 32], strides = [1, 1]} : vector<8x128xf32> to vector<8x32xf32>
    %330 = arith.negf %329 : vector<8x32xf32>
    %331 = math.exp %330 : vector<8x32xf32>
    %cst_63 = arith.constant 1.000000e+00 : f32
    %332 = vector.broadcast %cst_63 : f32 to vector<8x32xf32>
    %333 = arith.addf %332, %331 : vector<8x32xf32>
    %334 = arith.divf %332, %333 : vector<8x32xf32>
    %335 = vector.extract_strided_slice %328 {offsets = [0, 32], sizes = [8, 32], strides = [1, 1]} : vector<8x128xf32> to vector<8x32xf32>
    %336 = arith.negf %335 : vector<8x32xf32>
    %337 = math.exp %336 : vector<8x32xf32>
    %cst_64 = arith.constant 1.000000e+00 : f32
    %338 = vector.broadcast %cst_64 : f32 to vector<8x32xf32>
    %339 = arith.addf %338, %337 : vector<8x32xf32>
    %340 = arith.divf %338, %339 : vector<8x32xf32>
    %341 = vector.extract_strided_slice %328 {offsets = [0, 64], sizes = [8, 32], strides = [1, 1]} : vector<8x128xf32> to vector<8x32xf32>
    %342 = math.tanh %341 : vector<8x32xf32>
    %343 = vector.extract_strided_slice %328 {offsets = [0, 96], sizes = [8, 32], strides = [1, 1]} : vector<8x128xf32> to vector<8x32xf32>
    %344 = arith.negf %343 : vector<8x32xf32>
    %345 = math.exp %344 : vector<8x32xf32>
    %cst_65 = arith.constant 1.000000e+00 : f32
    %346 = vector.broadcast %cst_65 : f32 to vector<8x32xf32>
    %347 = arith.addf %346, %345 : vector<8x32xf32>
    %348 = arith.divf %346, %347 : vector<8x32xf32>
    %349 = arith.mulf %340, %323 : vector<8x32xf32>
    %350 = arith.mulf %334, %342 : vector<8x32xf32>
    %351 = arith.addf %349, %350 : vector<8x32xf32>
    %352 = math.tanh %351 : vector<8x32xf32>
    %353 = arith.mulf %348, %352 : vector<8x32xf32>
    %354 = vector.extract_strided_slice %239 {offsets = [32, 0], sizes = [8, 128], strides = [1, 1]} : vector<64x128xf32> to vector<8x128xf32>
    %cst_66 = arith.constant dense<0.000000e+00> : vector<8x128xf32>
    %355 = tpu.matmul %353, %235, %cst_66 {dimension_numbers = #tpu.dot_dimension_numbers<[1], [0], [0], [1], [0, 0, 1, 1], [], []>} : vector<8x32xf32>, vector<32x128xf32>, vector<8x128xf32> -> vector<8x128xf32>
    %356 = arith.addf %354, %355 : vector<8x128xf32>
    %357 = vector.extract_strided_slice %356 {offsets = [0, 0], sizes = [8, 32], strides = [1, 1]} : vector<8x128xf32> to vector<8x32xf32>
    %358 = arith.negf %357 : vector<8x32xf32>
    %359 = math.exp %358 : vector<8x32xf32>
    %cst_67 = arith.constant 1.000000e+00 : f32
    %360 = vector.broadcast %cst_67 : f32 to vector<8x32xf32>
    %361 = arith.addf %360, %359 : vector<8x32xf32>
    %362 = arith.divf %360, %361 : vector<8x32xf32>
    %363 = vector.extract_strided_slice %356 {offsets = [0, 32], sizes = [8, 32], strides = [1, 1]} : vector<8x128xf32> to vector<8x32xf32>
    %364 = arith.negf %363 : vector<8x32xf32>
    %365 = math.exp %364 : vector<8x32xf32>
    %cst_68 = arith.constant 1.000000e+00 : f32
    %366 = vector.broadcast %cst_68 : f32 to vector<8x32xf32>
    %367 = arith.addf %366, %365 : vector<8x32xf32>
    %368 = arith.divf %366, %367 : vector<8x32xf32>
    %369 = vector.extract_strided_slice %356 {offsets = [0, 64], sizes = [8, 32], strides = [1, 1]} : vector<8x128xf32> to vector<8x32xf32>
    %370 = math.tanh %369 : vector<8x32xf32>
    %371 = vector.extract_strided_slice %356 {offsets = [0, 96], sizes = [8, 32], strides = [1, 1]} : vector<8x128xf32> to vector<8x32xf32>
    %372 = arith.negf %371 : vector<8x32xf32>
    %373 = math.exp %372 : vector<8x32xf32>
    %cst_69 = arith.constant 1.000000e+00 : f32
    %374 = vector.broadcast %cst_69 : f32 to vector<8x32xf32>
    %375 = arith.addf %374, %373 : vector<8x32xf32>
    %376 = arith.divf %374, %375 : vector<8x32xf32>
    %377 = arith.mulf %368, %351 : vector<8x32xf32>
    %378 = arith.mulf %362, %370 : vector<8x32xf32>
    %379 = arith.addf %377, %378 : vector<8x32xf32>
    %380 = math.tanh %379 : vector<8x32xf32>
    %381 = arith.mulf %376, %380 : vector<8x32xf32>
    %382 = vector.extract_strided_slice %239 {offsets = [40, 0], sizes = [8, 128], strides = [1, 1]} : vector<64x128xf32> to vector<8x128xf32>
    %cst_70 = arith.constant dense<0.000000e+00> : vector<8x128xf32>
    %383 = tpu.matmul %381, %235, %cst_70 {dimension_numbers = #tpu.dot_dimension_numbers<[1], [0], [0], [1], [0, 0, 1, 1], [], []>} : vector<8x32xf32>, vector<32x128xf32>, vector<8x128xf32> -> vector<8x128xf32>
    %384 = arith.addf %382, %383 : vector<8x128xf32>
    %385 = vector.extract_strided_slice %384 {offsets = [0, 0], sizes = [8, 32], strides = [1, 1]} : vector<8x128xf32> to vector<8x32xf32>
    %386 = arith.negf %385 : vector<8x32xf32>
    %387 = math.exp %386 : vector<8x32xf32>
    %cst_71 = arith.constant 1.000000e+00 : f32
    %388 = vector.broadcast %cst_71 : f32 to vector<8x32xf32>
    %389 = arith.addf %388, %387 : vector<8x32xf32>
    %390 = arith.divf %388, %389 : vector<8x32xf32>
    %391 = vector.extract_strided_slice %384 {offsets = [0, 32], sizes = [8, 32], strides = [1, 1]} : vector<8x128xf32> to vector<8x32xf32>
    %392 = arith.negf %391 : vector<8x32xf32>
    %393 = math.exp %392 : vector<8x32xf32>
    %cst_72 = arith.constant 1.000000e+00 : f32
    %394 = vector.broadcast %cst_72 : f32 to vector<8x32xf32>
    %395 = arith.addf %394, %393 : vector<8x32xf32>
    %396 = arith.divf %394, %395 : vector<8x32xf32>
    %397 = vector.extract_strided_slice %384 {offsets = [0, 64], sizes = [8, 32], strides = [1, 1]} : vector<8x128xf32> to vector<8x32xf32>
    %398 = math.tanh %397 : vector<8x32xf32>
    %399 = vector.extract_strided_slice %384 {offsets = [0, 96], sizes = [8, 32], strides = [1, 1]} : vector<8x128xf32> to vector<8x32xf32>
    %400 = arith.negf %399 : vector<8x32xf32>
    %401 = math.exp %400 : vector<8x32xf32>
    %cst_73 = arith.constant 1.000000e+00 : f32
    %402 = vector.broadcast %cst_73 : f32 to vector<8x32xf32>
    %403 = arith.addf %402, %401 : vector<8x32xf32>
    %404 = arith.divf %402, %403 : vector<8x32xf32>
    %405 = arith.mulf %396, %379 : vector<8x32xf32>
    %406 = arith.mulf %390, %398 : vector<8x32xf32>
    %407 = arith.addf %405, %406 : vector<8x32xf32>
    %408 = math.tanh %407 : vector<8x32xf32>
    %409 = arith.mulf %404, %408 : vector<8x32xf32>
    %410 = vector.extract_strided_slice %239 {offsets = [48, 0], sizes = [8, 128], strides = [1, 1]} : vector<64x128xf32> to vector<8x128xf32>
    %cst_74 = arith.constant dense<0.000000e+00> : vector<8x128xf32>
    %411 = tpu.matmul %409, %235, %cst_74 {dimension_numbers = #tpu.dot_dimension_numbers<[1], [0], [0], [1], [0, 0, 1, 1], [], []>} : vector<8x32xf32>, vector<32x128xf32>, vector<8x128xf32> -> vector<8x128xf32>
    %412 = arith.addf %410, %411 : vector<8x128xf32>
    %413 = vector.extract_strided_slice %412 {offsets = [0, 0], sizes = [8, 32], strides = [1, 1]} : vector<8x128xf32> to vector<8x32xf32>
    %414 = arith.negf %413 : vector<8x32xf32>
    %415 = math.exp %414 : vector<8x32xf32>
    %cst_75 = arith.constant 1.000000e+00 : f32
    %416 = vector.broadcast %cst_75 : f32 to vector<8x32xf32>
    %417 = arith.addf %416, %415 : vector<8x32xf32>
    %418 = arith.divf %416, %417 : vector<8x32xf32>
    %419 = vector.extract_strided_slice %412 {offsets = [0, 32], sizes = [8, 32], strides = [1, 1]} : vector<8x128xf32> to vector<8x32xf32>
    %420 = arith.negf %419 : vector<8x32xf32>
    %421 = math.exp %420 : vector<8x32xf32>
    %cst_76 = arith.constant 1.000000e+00 : f32
    %422 = vector.broadcast %cst_76 : f32 to vector<8x32xf32>
    %423 = arith.addf %422, %421 : vector<8x32xf32>
    %424 = arith.divf %422, %423 : vector<8x32xf32>
    %425 = vector.extract_strided_slice %412 {offsets = [0, 64], sizes = [8, 32], strides = [1, 1]} : vector<8x128xf32> to vector<8x32xf32>
    %426 = math.tanh %425 : vector<8x32xf32>
    %427 = vector.extract_strided_slice %412 {offsets = [0, 96], sizes = [8, 32], strides = [1, 1]} : vector<8x128xf32> to vector<8x32xf32>
    %428 = arith.negf %427 : vector<8x32xf32>
    %429 = math.exp %428 : vector<8x32xf32>
    %cst_77 = arith.constant 1.000000e+00 : f32
    %430 = vector.broadcast %cst_77 : f32 to vector<8x32xf32>
    %431 = arith.addf %430, %429 : vector<8x32xf32>
    %432 = arith.divf %430, %431 : vector<8x32xf32>
    %433 = arith.mulf %424, %407 : vector<8x32xf32>
    %434 = arith.mulf %418, %426 : vector<8x32xf32>
    %435 = arith.addf %433, %434 : vector<8x32xf32>
    %436 = math.tanh %435 : vector<8x32xf32>
    %437 = arith.mulf %432, %436 : vector<8x32xf32>
    %438 = vector.extract_strided_slice %239 {offsets = [56, 0], sizes = [8, 128], strides = [1, 1]} : vector<64x128xf32> to vector<8x128xf32>
    %cst_78 = arith.constant dense<0.000000e+00> : vector<8x128xf32>
    %439 = tpu.matmul %437, %235, %cst_78 {dimension_numbers = #tpu.dot_dimension_numbers<[1], [0], [0], [1], [0, 0, 1, 1], [], []>} : vector<8x32xf32>, vector<32x128xf32>, vector<8x128xf32> -> vector<8x128xf32>
    %440 = arith.addf %438, %439 : vector<8x128xf32>
    %441 = vector.extract_strided_slice %440 {offsets = [0, 0], sizes = [8, 32], strides = [1, 1]} : vector<8x128xf32> to vector<8x32xf32>
    %442 = arith.negf %441 : vector<8x32xf32>
    %443 = math.exp %442 : vector<8x32xf32>
    %cst_79 = arith.constant 1.000000e+00 : f32
    %444 = vector.broadcast %cst_79 : f32 to vector<8x32xf32>
    %445 = arith.addf %444, %443 : vector<8x32xf32>
    %446 = arith.divf %444, %445 : vector<8x32xf32>
    %447 = vector.extract_strided_slice %440 {offsets = [0, 32], sizes = [8, 32], strides = [1, 1]} : vector<8x128xf32> to vector<8x32xf32>
    %448 = arith.negf %447 : vector<8x32xf32>
    %449 = math.exp %448 : vector<8x32xf32>
    %cst_80 = arith.constant 1.000000e+00 : f32
    %450 = vector.broadcast %cst_80 : f32 to vector<8x32xf32>
    %451 = arith.addf %450, %449 : vector<8x32xf32>
    %452 = arith.divf %450, %451 : vector<8x32xf32>
    %453 = vector.extract_strided_slice %440 {offsets = [0, 64], sizes = [8, 32], strides = [1, 1]} : vector<8x128xf32> to vector<8x32xf32>
    %454 = math.tanh %453 : vector<8x32xf32>
    %455 = vector.extract_strided_slice %440 {offsets = [0, 96], sizes = [8, 32], strides = [1, 1]} : vector<8x128xf32> to vector<8x32xf32>
    %456 = arith.negf %455 : vector<8x32xf32>
    %457 = math.exp %456 : vector<8x32xf32>
    %cst_81 = arith.constant 1.000000e+00 : f32
    %458 = vector.broadcast %cst_81 : f32 to vector<8x32xf32>
    %459 = arith.addf %458, %457 : vector<8x32xf32>
    %460 = arith.divf %458, %459 : vector<8x32xf32>
    %461 = arith.mulf %452, %435 : vector<8x32xf32>
    %462 = arith.mulf %446, %454 : vector<8x32xf32>
    %463 = arith.addf %461, %462 : vector<8x32xf32>
    %464 = math.tanh %463 : vector<8x32xf32>
    %465 = arith.mulf %460, %464 : vector<8x32xf32>
    %c0_82 = arith.constant 0 : index
    %c0_83 = arith.constant 0 : index
    %466 = vector.load %arg7[%c0_82, %c0_83] : memref<32x128xf32, #tpu.memory_space<vmem>>, vector<32x128xf32>
    %cst_84 = arith.constant dense<0.000000e+00> : vector<8x128xf32>
    %467 = tpu.matmul %465, %466, %cst_84 {dimension_numbers = #tpu.dot_dimension_numbers<[1], [0], [0], [1], [0, 0, 1, 1], [], []>} : vector<8x32xf32>, vector<32x128xf32>, vector<8x128xf32> -> vector<8x128xf32>
    %c0_85 = arith.constant 0 : index
    %c0_86 = arith.constant 0 : index
    %468 = vector.load %arg8[%c0_85, %c0_86] : memref<1x128xf32, #tpu.memory_space<vmem>>, vector<1x128xf32>
    %469 = vector.broadcast %468 : vector<1x128xf32> to vector<8x128xf32>
    %470 = arith.addf %467, %469 : vector<8x128xf32>
    %c0_87 = arith.constant 0 : index
    %c0_88 = arith.constant 0 : index
    %471 = vector.load %arg9[%c0_87, %c0_88] : memref<8x128xf32, #tpu.memory_space<vmem>>, vector<8x128xf32>
    tpu.vector_store %arg9[%c0_87, %c0_88], %470 {strides = array<i32>} : memref<8x128xf32, #tpu.memory_space<vmem>>, vector<8x128xf32>,
    return
  }
}

</mosaic_0001>

<bundles_post_ra>
// kernel: lstm_model_forward.1
= control target key start
LH: loop header
LB: loop body
LE: loop exit
PB: predicated region body
PF: predicated region fallthrough
CT: control target
= control target key end

     0   :  { %vm50_vm0 = vcmask 130048   ;;  %v1396_v7 = vmov 0.0   ;;  %s1397_s23 = smov 64   ;;  %s1398_s24 = smov 32   ;;  %vm116_vm5 = vcmask 261120   ;;  %s1759_s2 = inlined_call_operand.vmem [shape: f32[32,128], index: 2, kind: input, shape index: {}]   ;;  %s1760_s1 = inlined_call_operand.vmem [shape: f32[16,128], index: 1, kind: input, shape index: {}]   ;;  %s1761_s0 = inlined_call_operand.vmem [shape: f32[64,16], index: 0, kind: input, shape index: {}]   ;;  %s1762_s3 = inlined_call_operand.vmem [shape: f32[1,128], index: 3, kind: input, shape index: {}]   ;;  %s1763_s4 = inlined_call_operand.vmem [shape: f32[32,128], index: 4, kind: input, shape index: {}]   ;;  %s1764_s6 = inlined_call_operand.vmem [shape: f32[1,128], index: 6, kind: input, shape index: {}]   ;;  %s1765_s5 = inlined_call_operand.vmem [shape: f32[32,128], index: 5, kind: input, shape index: {}]   ;;  %s1766_s7 = inlined_call_operand.vmem [shape: f32[32,128], index: 7, kind: input, shape index: {}]   ;;  %s1767_s8 = inlined_call_operand.vmem [shape: f32[1,128], index: 8, kind: input, shape index: {}]   ;;  %s1768_s9 = inlined_call_operand.vmem [shape: f32[8,128], index: 9, kind: output, shape index: {}]  }
   0x1   :  { %v1452_v0 = vld [vmem:[%s1759_s2 + $0x18] sm:$0xff]  ;;  %v41_v1 = vld [vmem:[%s1760_s1 + $0x8] sm:$0xff]  ;;  %v1460_v2 = vld [vmem:[%s1759_s2 + $0x10] sm:$0xff] }
   0x2   :  { %132 = vmatpush.msra.mxu1 %v1452_v0  ;;  %89 = vmatpush.msra.mxu0 %v41_v1  ;;  %v40_v3 = vld [vmem:[%s1760_s1] sm:$0xff]  ;;  %v1472_v5 = vld [vmem:[%s1759_s2 + $0x8] sm:$0xff]  ;;  %v622_v33 = vld [vmem:[%s1763_s4 + $0x18] sm:$0xff] }
   0x3   :  { %v32_v4 = vld [vmem:[%s1761_s0] sm:$0xff]  ;;  %195 = vmatpush.msra.mxu2 %v1452_v0  ;;  %v621_v34 = vld [vmem:[%s1763_s4 + $0x10] sm:$0xff]  ;;  %648 = vmatpush.msra.mxu3 %v622_v33  ;;  %v620_v35 = vld [vmem:[%s1763_s4 + $0x8] sm:$0xff] }
   0x4   :  { %133 = vmatpush.msra.mxu1 %v1460_v2  ;;  %90 = vmatpush.msra.mxu0 %v40_v3  ;;  %v1480_v6 = vld [vmem:[%s1759_s2] sm:$0xff]  ;;  %v33_v39 = vld [vmem:[%s1761_s0 + $0x8] sm:$0xff] }
   0x5   :  { %1214 = vmatmul.msk.f32.vlgmr.msra.gmra.mxu0 %vm50_vm0, %v32_v4  ;;  %196 = vmatpush.msra.mxu2 %v1460_v2  ;;  %v1507_v8 = vld [vmem:[%s1762_s3] ss:$0 sm:$0xff] }
   0x6   :  { %134 = vmatpush.msra.mxu1 %v1472_v5  ;;  %447 = vmatpush.msrb.mxu0 %v1452_v0  ;;  %v619_v36 = vld [vmem:[%s1763_s4] sm:$0xff] }
   0x7   :  { %197 = vmatpush.msra.mxu2 %v1472_v5  ;;  %649 = vmatpush.msra.mxu3 %v621_v34 }
   0x8   :  { %135 = vmatpush.msra.mxu1 %v1480_v6  ;;  %448 = vmatpush.msrb.mxu0 %v1460_v2 }
   0x9   :  { %136 = vmatmul.f32.vlgmr.msra.gmra.mxu1 %v1396_v7  ;;  %198 = vmatpush.msra.mxu2 %v1480_v6 }
   0xa   :  { %321 = vmatpush.msrb.mxu1 %v1452_v0  ;;  %449 = vmatpush.msrb.mxu0 %v1472_v5 }
   0xb   :  { %258 = vmatpush.msrb.mxu2 %v1452_v0  ;;  %650 = vmatpush.msra.mxu3 %v620_v35 }
   0xc   :  { %322 = vmatpush.msrb.mxu1 %v1460_v2  ;;  %450 = vmatpush.msrb.mxu0 %v1480_v6 }
   0xd   :  { %259 = vmatpush.msrb.mxu2 %v1460_v2  ;;  %651 = vmatpush.msra.mxu3 %v619_v36 }
   0xe   :  { %323 = vmatpush.msrb.mxu1 %v1472_v5  ;;  %1215 = vmatmul.msk.f32.gmra.mxu0 %vm50_vm0, %v33_v39 }
   0xf   :  { %260 = vmatpush.msrb.mxu2 %v1472_v5 }
  0x10   :  { %324 = vmatpush.msrb.mxu1 %v1480_v6 }
  0x11   :  { %261 = vmatpush.msrb.mxu2 %v1480_v6 }
  0x12   :  { %510 = vmatpush.msra.mxu1 %v1452_v0 }
  0x14   :  { %511 = vmatpush.msra.mxu1 %v1460_v2 }
  0x16   :  { %512 = vmatpush.msra.mxu1 %v1472_v5 }
  0x18   :  { %513 = vmatpush.msra.mxu1 %v1480_v6 }
  0x82   :  { %v92_v9 = vpop.f32.mrf.mxu0 }
  0x83   :  { %v93_v10 = vadd.f32 %v1507_v8, %v92_v9  ;;  %v34_v9 = vld [vmem:[%s1761_s0 + $0x10] sm:$0xff] }
  0x84   :  { %1216 = vmatmul.msk.f32.gmra.mxu0 %vm50_vm0, %v34_v9 }
  0x86   :  { %v137_v11 = vpop.f32.mrf.mxu1 }
  0x87   :  { %v140_v12 = vadd.f32 %v137_v11, %v93_v10 }
  0x89   :  { %1267 = vtanh.f32 %v140_v12  ;;  %v1222_v14 = vmul.f32 -1.442695, %v140_v12 }
  0x8b   :  { %1269 = vpow2.f32 %v1222_v14  ;;  %v95_v41 = vpop.f32.mrf.mxu0 }
  0x8c   :  { %v96_v42 = vadd.f32 %v1507_v8, %v95_v41 }
  0x8f   :  { %v1268_v13 = vpop.eup %1267 }
  0x90   :  { %163 = vrot.lane.b32.xlu0 %v1268_v13, %s1397_s23 }
  0x91   :  { %v1270_v15 = vpop.eup %1269 }
  0x92   :  { %v144_v16 = vadd.f32 1.0, %v1270_v15 }
  0x94   :  { %1271 = vrcp.f32 %v144_v16  ;;  %v156_v22 = vand.u32 2147483648, %v144_v16  ;;  %vm150_vm2 = vweird.f32 %v144_v16  ;;  %v154_v23 = vand.u32 2147483647, %v144_v16 }
  0x96   :  { %v157_v25 = vor.u32 1.1754944e-38, %v156_v22  ;;  %vm155_vm4 = vcmp.eq.f32.partialorder %v154_v23, 8.507059e+37 }
  0x9a   :  { %v1272_v17 = vpop.eup %1271 }
  0x9b   :  { %v146_v18 = vmul.f32 %v1272_v17, %v144_v16  ;;  %vm151_vm1 = vweird.f32 %v1272_v17 }
  0x9c   :  { %vm152_vm3 = vmor %vm150_vm2, %vm151_vm1 }
  0x9d   :  { %v147_v19 = vsub.f32 1.0, %v146_v18 }
  0x9f   :  { %v148_v20 = vmul.f32 %v1272_v17, %v147_v19 }
  0xa1   :  { %v149_v21 = vadd.f32 %v1272_v17, %v148_v20 }
  0xa3   :  { %v153_v24 = vsel %vm152_vm3, %v1272_v17, %v149_v21 }
  0xa4   :  { %v158_v27 = vsel %vm155_vm4, %v157_v25, %v153_v24 }
  0xa5   :  { %v161_v29 = vmul.f32 0.0, %v158_v27 }
 0x101   :  { %v98_v11 = vpop.f32.mrf.mxu0 }
 0x102   :  { %v164_v26 = vpop.permute.xlu0 %163  ;;  %v99_v12 = vadd.f32 %v1507_v8, %v98_v11 }
 0x103   :  { %v166_v28 = vmul.f32 %v164_v26, %v158_v27 }
 0x105   :  { %168 = vrot.lane.b32.xlu0 %v166_v28, %s1398_s24 }
 0x177   :  { %v169_v30 = vpop.permute.xlu0 %168 }
 0x178   :  { %v171_v31 = vadd.f32 %v169_v30, %v161_v29 }
 0x17a   :  { %1273 = vtanh.f32 %v171_v31 }
 0x180   :  { %v1274_v32 = vpop.eup %1273 }
 0x181   :  { %174 = vrot.lane.b32.xlu1 %v1274_v32, %s1397_s23 }
 0x1f3   :  { %v175_v37 = vpop.permute.xlu1 %174 }
 0x1f4   :  { %v177_v38 = vmul.f32 %v175_v37, %v158_v27 }
 0x1f6   :  { %179 = vrot.lane.b32.xlu1 %v177_v38, %s1398_s24 }
 0x268   :  { %v180_v40 = vpop.permute.xlu1 %179 }
 0x269   :  { %1223 = vmatmul.msk.f32.vlgmr.msra.gmra.mxu2 %vm116_vm5, %v180_v40  ;;  %1237 = vmatmul.msk.f32.vlgmr.msra.gmra.mxu3 %vm116_vm5, %v180_v40 }
 0x26a   :  { %384 = vmatpush.msra.mxu2 %v1452_v0 }
 0x26c   :  { %385 = vmatpush.msra.mxu2 %v1460_v2 }
 0x26e   :  { %386 = vmatpush.msra.mxu2 %v1472_v5 }
 0x270   :  { %387 = vmatpush.msra.mxu2 %v1480_v6 }
 0x2ec   :  { %v200_v43 = vpop.f32.mrf.mxu2 }
 0x2ed   :  { %v203_v44 = vadd.f32 %v200_v43, %v96_v42 }
 0x2ef   :  { %1275 = vtanh.f32 %v203_v44  ;;  %v1224_v46 = vmul.f32 -1.442695, %v203_v44 }
 0x2f1   :  { %1277 = vpow2.f32 %v1224_v46 }
 0x2f5   :  { %v1276_v45 = vpop.eup %1275 }
 0x2f6   :  { %226 = vrot.lane.b32.xlu2 %v1276_v45, %s1397_s23 }
 0x2f7   :  { %v1278_v47 = vpop.eup %1277 }
 0x2f8   :  { %v207_v48 = vadd.f32 1.0, %v1278_v47 }
 0x2fa   :  { %1279 = vrcp.f32 %v207_v48  ;;  %v219_v54 = vand.u32 2147483648, %v207_v48  ;;  %vm213_vm7 = vweird.f32 %v207_v48  ;;  %v217_v55 = vand.u32 2147483647, %v207_v48 }
 0x2fc   :  { %v220_v57 = vor.u32 1.1754944e-38, %v219_v54  ;;  %vm218_vm9 = vcmp.eq.f32.partialorder %v217_v55, 8.507059e+37 }
 0x300   :  { %v1280_v49 = vpop.eup %1279 }
 0x301   :  { %v209_v50 = vmul.f32 %v1280_v49, %v207_v48  ;;  %vm214_vm6 = vweird.f32 %v1280_v49 }
 0x302   :  { %vm215_vm8 = vmor %vm213_vm7, %vm214_vm6 }
 0x303   :  { %v210_v51 = vsub.f32 1.0, %v209_v50 }
 0x305   :  { %v211_v52 = vmul.f32 %v1280_v49, %v210_v51 }
 0x307   :  { %v212_v53 = vadd.f32 %v1280_v49, %v211_v52 }
 0x309   :  { %v216_v56 = vsel %vm215_vm8, %v1280_v49, %v212_v53 }
 0x30a   :  { %v221_v59 = vsel %vm218_vm9, %v220_v57, %v216_v56 }
 0x30b   :  { %v224_v61 = vmul.f32 %v221_v59, %v171_v31  ;;  %v35_v31 = vld [vmem:[%s1761_s0 + $0x18] sm:$0xff] }
 0x30c   :  { %1217 = vmatmul.msk.f32.gmra.mxu0 %vm50_vm0, %v35_v31 }
 0x350   :  { %v227_v58 = vpop.permute.xlu2 %226 }
 0x351   :  { %v229_v60 = vmul.f32 %v227_v58, %v221_v59 }
 0x353   :  { %231 = vrot.lane.b32.xlu2 %v229_v60, %s1398_s24 }
 0x389   :  { %v101_v35 = vpop.f32.mrf.mxu0 }
 0x38a   :  { %v102_v36 = vadd.f32 %v1507_v8, %v101_v35 }
 0x3ad   :  { %v232_v62 = vpop.permute.xlu2 %231 }
 0x3ae   :  { %v234_v63 = vadd.f32 %v232_v62, %v224_v61  ;;  %v36_v61 = vld [vmem:[%s1761_s0 + $0x20] sm:$0xff] }
 0x3af   :  { %1218 = vmatmul.msk.f32.gmra.mxu0 %vm50_vm0, %v36_v61  ;;  %v1619_v61 = vld [vmem:[%s1765_s5 + $0x8] sm:$0xff] }
 0x3b0   :  { %1281 = vtanh.f32 %v234_v63 }
 0x3b6   :  { %v1282_v1 = vpop.eup %1281 }
 0x3b7   :  { %237 = vrot.lane.b32.xlu0 %v1282_v1, %s1397_s23 }
 0x429   :  { %v238_v3 = vpop.permute.xlu0 %237 }
 0x42a   :  { %v240_v4 = vmul.f32 %v238_v3, %v221_v59 }
 0x42c   :  { %242 = vrot.lane.b32.xlu1 %v240_v4, %s1398_s24 }
 0x49e   :  { %v243_v10 = vpop.permute.xlu1 %242 }
 0x49f   :  { %1225 = vmatmul.msk.f32.vlgmr.msrb.gmra.mxu2 %vm116_vm5, %v243_v10  ;;  %1238 = vmatmul.msk.f32.gmra.mxu3 %vm116_vm5, %v243_v10 }
 0x4a0   :  { %573 = vmatpush.msrb.mxu2 %v1452_v0 }
 0x4a2   :  { %574 = vmatpush.msrb.mxu2 %v1460_v2 }
 0x4a4   :  { %575 = vmatpush.msrb.mxu2 %v1472_v5 }
 0x4a6   :  { %576 = vmatpush.msrb.mxu2 %v1480_v6 }
 0x522   :  { %v263_v13 = vpop.f32.mrf.mxu2 }
 0x523   :  { %v266_v14 = vadd.f32 %v263_v13, %v99_v12 }
 0x525   :  { %1283 = vtanh.f32 %v266_v14  ;;  %v1226_v16 = vmul.f32 -1.442695, %v266_v14 }
 0x527   :  { %1285 = vpow2.f32 %v1226_v16 }
 0x52b   :  { %v1284_v15 = vpop.eup %1283 }
 0x52c   :  { %289 = vrot.lane.b32.xlu2 %v1284_v15, %s1397_s23 }
 0x52d   :  { %v1286_v17 = vpop.eup %1285 }
 0x52e   :  { %v270_v18 = vadd.f32 1.0, %v1286_v17 }
 0x530   :  { %1287 = vrcp.f32 %v270_v18  ;;  %v282_v6 = vand.u32 2147483648, %v270_v18  ;;  %vm276_vm11 = vweird.f32 %v270_v18  ;;  %v280_v21 = vand.u32 2147483647, %v270_v18 }
 0x532   :  { %v283_v23 = vor.u32 1.1754944e-38, %v282_v6  ;;  %vm281_vm13 = vcmp.eq.f32.partialorder %v280_v21, 8.507059e+37 }
 0x536   :  { %v1288_v0 = vpop.eup %1287 }
 0x537   :  { %v272_v2 = vmul.f32 %v1288_v0, %v270_v18  ;;  %vm277_vm10 = vweird.f32 %v1288_v0 }
 0x538   :  { %vm278_vm12 = vmor %vm276_vm11, %vm277_vm10 }
 0x539   :  { %v273_v19 = vsub.f32 1.0, %v272_v2 }
 0x53b   :  { %v274_v5 = vmul.f32 %v1288_v0, %v273_v19 }
 0x53d   :  { %v275_v20 = vadd.f32 %v1288_v0, %v274_v5 }
 0x53f   :  { %v279_v22 = vsel %vm278_vm12, %v1288_v0, %v275_v20 }
 0x540   :  { %v284_v25 = vsel %vm281_vm13, %v283_v23, %v279_v22 }
 0x541   :  { %v287_v27 = vmul.f32 %v284_v25, %v234_v63  ;;  %v104_v63 = vpop.f32.mrf.mxu0 }
 0x542   :  { %v105_v1 = vadd.f32 %v1507_v8, %v104_v63 }
 0x586   :  { %v290_v24 = vpop.permute.xlu2 %289 }
 0x587   :  { %v292_v26 = vmul.f32 %v290_v24, %v284_v25 }
 0x589   :  { %294 = vrot.lane.b32.xlu0 %v292_v26, %s1398_s24  ;;  %v38_v26 = vld [vmem:[%s1761_s0 + $0x30] sm:$0xff] }
 0x5fb   :  { %v295_v28 = vpop.permute.xlu0 %294 }
 0x5fc   :  { %v297_v29 = vadd.f32 %v295_v28, %v287_v27  ;;  %v39_v27 = vld [vmem:[%s1761_s0 + $0x38] sm:$0xff] }
 0x5fe   :  { %1289 = vtanh.f32 %v297_v29 }
 0x604   :  { %v1290_v30 = vpop.eup %1289 }
 0x605   :  { %300 = vrot.lane.b32.xlu1 %v1290_v30, %s1397_s23 }
 0x677   :  { %v301_v32 = vpop.permute.xlu1 %300 }
 0x678   :  { %v303_v33 = vmul.f32 %v301_v32, %v284_v25  ;;  %v37_v25 = vld [vmem:[%s1761_s0 + $0x28] sm:$0xff] }
 0x679   :  { %1219 = vmatmul.msk.f32.gmra.mxu0 %vm50_vm0, %v37_v25 }
 0x67a   :  { %305 = vrot.lane.b32.xlu2 %v303_v33, %s1398_s24 }
 0x681   :  { %1220 = vmatmul.msk.f32.gmra.mxu0 %vm50_vm0, %v38_v26 }
 0x689   :  { %1221 = vmatmul.msk.f32.gmra.mxu0 %vm50_vm0, %v39_v27 }
 0x6d4   :  { %v306_v34 = vpop.permute.xlu2 %305 }
 0x6d5   :  { %1227 = vmatmul.msk.f32.vlgmr.msrb.gmra.mxu1 %vm116_vm5, %v306_v34  ;;  %1239 = vmatmul.msk.f32.gmra.mxu3 %vm116_vm5, %v306_v34 }
 0x6f6   :  { %v107_v31 = vpop.f32.mrf.mxu0 }
 0x6f7   :  { %v108_v34 = vadd.f32 %v1507_v8, %v107_v31 }
 0x6fe   :  { %v1592_v32 = vpop.f32.mrf.mxu0 }
 0x706   :  { %v1594_v33 = vpop.f32.mrf.mxu0 }
 0x752   :  { %v326_v37 = vpop.f32.mrf.mxu1 }
 0x753   :  { %v329_v38 = vadd.f32 %v326_v37, %v102_v36 }
 0x755   :  { %1291 = vtanh.f32 %v329_v38  ;;  %v1228_v40 = vmul.f32 -1.442695, %v329_v38 }
 0x757   :  { %1293 = vpow2.f32 %v1228_v40 }
 0x75b   :  { %v1292_v39 = vpop.eup %1291 }
 0x75c   :  { %352 = vrot.lane.b32.xlu0 %v1292_v39, %s1397_s23 }
 0x75d   :  { %v1294_v41 = vpop.eup %1293 }
 0x75e   :  { %v333_v42 = vadd.f32 1.0, %v1294_v41 }
 0x760   :  { %1295 = vrcp.f32 %v333_v42  ;;  %v345_v48 = vand.u32 2147483648, %v333_v42  ;;  %vm339_vm15 = vweird.f32 %v333_v42  ;;  %v343_v49 = vand.u32 2147483647, %v333_v42 }
 0x762   :  { %v346_v51 = vor.u32 1.1754944e-38, %v345_v48  ;;  %vm344_vm2 = vcmp.eq.f32.partialorder %v343_v49, 8.507059e+37 }
 0x766   :  { %v1296_v43 = vpop.eup %1295 }
 0x767   :  { %v335_v44 = vmul.f32 %v1296_v43, %v333_v42  ;;  %vm340_vm14 = vweird.f32 %v1296_v43 }
 0x768   :  { %vm341_vm1 = vmor %vm339_vm15, %vm340_vm14 }
 0x769   :  { %v336_v45 = vsub.f32 1.0, %v335_v44 }
 0x76b   :  { %v337_v46 = vmul.f32 %v1296_v43, %v336_v45 }
 0x76d   :  { %v338_v47 = vadd.f32 %v1296_v43, %v337_v46 }
 0x76f   :  { %v342_v50 = vsel %vm341_vm1, %v1296_v43, %v338_v47 }
 0x770   :  { %v347_v53 = vsel %vm344_vm2, %v346_v51, %v342_v50 }
 0x771   :  { %v350_v55 = vmul.f32 %v347_v53, %v297_v29 }
 0x7ce   :  { %v353_v52 = vpop.permute.xlu0 %352 }
 0x7cf   :  { %v355_v54 = vmul.f32 %v353_v52, %v347_v53 }
 0x7d1   :  { %357 = vrot.lane.b32.xlu1 %v355_v54, %s1398_s24 }
 0x843   :  { %v358_v56 = vpop.permute.xlu1 %357 }
 0x844   :  { %v360_v57 = vadd.f32 %v358_v56, %v350_v55 }
 0x846   :  { %1297 = vtanh.f32 %v360_v57 }
 0x84c   :  { %v1298_v58 = vpop.eup %1297 }
 0x84d   :  { %363 = vrot.lane.b32.xlu2 %v1298_v58, %s1397_s23 }
 0x8a7   :  { %v364_v59 = vpop.permute.xlu2 %363 }
 0x8a8   :  { %v366_v60 = vmul.f32 %v364_v59, %v347_v53  ;;  %v1607_v59 = vld [vmem:[%s1765_s5 + $0x18] sm:$0xff] }
 0x8a9   :  { %689 = vmatpush.msrb.mxu1 %v1607_v59 }
 0x8aa   :  { %368 = vrot.lane.b32.xlu0 %v366_v60, %s1398_s24  ;;  %v1612_v60 = vld [vmem:[%s1765_s5 + $0x10] sm:$0xff] }
 0x8ab   :  { %690 = vmatpush.msrb.mxu1 %v1612_v60 }
 0x8ad   :  { %691 = vmatpush.msrb.mxu1 %v1619_v61 }
 0x91c   :  { %v369_v62 = vpop.permute.xlu0 %368 }
 0x91d   :  { %1229 = vmatmul.msk.f32.vlgmr.msra.gmra.mxu2 %vm116_vm5, %v369_v62  ;;  %1240 = vmatmul.msk.f32.gmra.mxu3 %vm116_vm5, %v369_v62  ;;  %v1626_v62 = vld [vmem:[%s1765_s5] sm:$0xff] }
 0x91e   :  { %752 = vmatpush.msra.mxu2 %v1607_v59  ;;  %692 = vmatpush.msrb.mxu1 %v1626_v62 }
 0x920   :  { %753 = vmatpush.msra.mxu2 %v1612_v60 }
 0x922   :  { %754 = vmatpush.msra.mxu2 %v1619_v61 }
 0x924   :  { %755 = vmatpush.msra.mxu2 %v1626_v62 }
 0x9a0   :  { %v389_v3 = vpop.f32.mrf.mxu2 }
 0x9a1   :  { %v392_v4 = vadd.f32 %v389_v3, %v105_v1  ;;  %v111_v1 = vadd.f32 %v1507_v8, %v1592_v32 }
 0x9a3   :  { %1299 = vtanh.f32 %v392_v4  ;;  %v1230_v10 = vmul.f32 -1.442695, %v392_v4 }
 0x9a5   :  { %1301 = vpow2.f32 %v1230_v10 }
 0x9a9   :  { %v1300_v9 = vpop.eup %1299 }
 0x9aa   :  { %415 = vrot.lane.b32.xlu1 %v1300_v9, %s1397_s23  ;;  %v1648_v9 = vld [vmem:[%s1764_s6] ss:$0 sm:$0xff] }
 0x9ab   :  { %v1302_v11 = vpop.eup %1301 }
 0x9ac   :  { %v396_v12 = vadd.f32 1.0, %v1302_v11 }
 0x9ae   :  { %1303 = vrcp.f32 %v396_v12  ;;  %v408_v18 = vand.u32 2147483648, %v396_v12  ;;  %vm402_vm4 = vweird.f32 %v396_v12  ;;  %v406_v0 = vand.u32 2147483647, %v396_v12 }
 0x9b0   :  { %v409_v19 = vor.u32 1.1754944e-38, %v408_v18  ;;  %vm407_vm7 = vcmp.eq.f32.partialorder %v406_v0, 8.507059e+37 }
 0x9b4   :  { %v1304_v13 = vpop.eup %1303 }
 0x9b5   :  { %v398_v14 = vmul.f32 %v1304_v13, %v396_v12  ;;  %vm403_vm3 = vweird.f32 %v1304_v13 }
 0x9b6   :  { %vm404_vm6 = vmor %vm402_vm4, %vm403_vm3 }
 0x9b7   :  { %v399_v15 = vsub.f32 1.0, %v398_v14 }
 0x9b9   :  { %v400_v16 = vmul.f32 %v1304_v13, %v399_v15 }
 0x9bb   :  { %v401_v17 = vadd.f32 %v1304_v13, %v400_v16 }
 0x9bd   :  { %v405_v2 = vsel %vm404_vm6, %v1304_v13, %v401_v17 }
 0x9be   :  { %v410_v20 = vsel %vm407_vm7, %v409_v19, %v405_v2 }
 0x9bf   :  { %v413_v21 = vmul.f32 %v410_v20, %v360_v57 }
 0xa1c   :  { %v416_v5 = vpop.permute.xlu1 %415 }
 0xa1d   :  { %v418_v6 = vmul.f32 %v416_v5, %v410_v20 }
 0xa1f   :  { %420 = vrot.lane.b32.xlu2 %v418_v6, %s1398_s24 }
 0xa79   :  { %v421_v22 = vpop.permute.xlu2 %420 }
 0xa7a   :  { %v423_v23 = vadd.f32 %v421_v22, %v413_v21 }
 0xa7c   :  { %1305 = vtanh.f32 %v423_v23 }
 0xa82   :  { %v1306_v24 = vpop.eup %1305 }
 0xa83   :  { %426 = vrot.lane.b32.xlu0 %v1306_v24, %s1397_s23 }
 0xaf5   :  { %v427_v28 = vpop.permute.xlu0 %426 }
 0xaf6   :  { %v429_v29 = vmul.f32 %v427_v28, %v410_v20 }
 0xaf8   :  { %431 = vrot.lane.b32.xlu1 %v429_v29, %s1398_s24 }
 0xb6a   :  { %v432_v30 = vpop.permute.xlu1 %431 }
 0xb6b   :  { %1231 = vmatmul.msk.f32.vlgmr.msrb.gmra.mxu0 %vm116_vm5, %v432_v30  ;;  %1241 = vmatmul.msk.f32.gmra.mxu3 %vm116_vm5, %v432_v30 }
 0xbe8   :  { %v452_v35 = vpop.f32.mrf.mxu0 }
 0xbe9   :  { %v455_v36 = vadd.f32 %v452_v35, %v108_v34 }
 0xbeb   :  { %1307 = vtanh.f32 %v455_v36  ;;  %v1232_v38 = vmul.f32 -1.442695, %v455_v36 }
 0xbed   :  { %1309 = vpow2.f32 %v1232_v38 }
 0xbf1   :  { %v1308_v37 = vpop.eup %1307 }
 0xbf2   :  { %478 = vrot.lane.b32.xlu2 %v1308_v37, %s1397_s23 }
 0xbf3   :  { %v1310_v39 = vpop.eup %1309 }
 0xbf4   :  { %v459_v40 = vadd.f32 1.0, %v1310_v39 }
 0xbf6   :  { %1311 = vrcp.f32 %v459_v40  ;;  %v471_v46 = vand.u32 2147483648, %v459_v40  ;;  %vm465_vm8 = vweird.f32 %v459_v40  ;;  %v469_v47 = vand.u32 2147483647, %v459_v40 }
 0xbf8   :  { %v472_v49 = vor.u32 1.1754944e-38, %v471_v46  ;;  %vm470_vm10 = vcmp.eq.f32.partialorder %v469_v47, 8.507059e+37 }
 0xbfc   :  { %v1312_v41 = vpop.eup %1311 }
 0xbfd   :  { %v461_v42 = vmul.f32 %v1312_v41, %v459_v40  ;;  %vm466_vm0 = vweird.f32 %v1312_v41 }
 0xbfe   :  { %vm467_vm9 = vmor %vm465_vm8, %vm466_vm0 }
 0xbff   :  { %v462_v43 = vsub.f32 1.0, %v461_v42 }
 0xc01   :  { %v463_v44 = vmul.f32 %v1312_v41, %v462_v43 }
 0xc03   :  { %v464_v45 = vadd.f32 %v1312_v41, %v463_v44 }
 0xc05   :  { %v468_v48 = vsel %vm467_vm9, %v1312_v41, %v464_v45 }
 0xc06   :  { %v473_v51 = vsel %vm470_vm10, %v472_v49, %v468_v48 }
 0xc07   :  { %v476_v53 = vmul.f32 %v473_v51, %v423_v23 }
 0xc4c   :  { %v479_v50 = vpop.permute.xlu2 %478 }
 0xc4d   :  { %v481_v52 = vmul.f32 %v479_v50, %v473_v51 }
 0xc4f   :  { %483 = vrot.lane.b32.xlu0 %v481_v52, %s1398_s24 }
 0xcc1   :  { %v484_v54 = vpop.permute.xlu0 %483 }
 0xcc2   :  { %v1599_v55 = vadd.f32 %v484_v54, %v476_v53 }
 0xcc4   :  { %1313 = vtanh.f32 %v1599_v55 }
 0xcca   :  { %v1314_v56 = vpop.eup %1313 }
 0xccb   :  { %489 = vrot.lane.b32.xlu1 %v1314_v56, %s1397_s23 }
 0xd3d   :  { %v490_v57 = vpop.permute.xlu1 %489 }
 0xd3e   :  { %v492_v58 = vmul.f32 %v490_v57, %v473_v51 }
 0xd40   :  { %494 = vrot.lane.b32.xlu2 %v492_v58, %s1398_s24 }
 0xd9a   :  { %v495_v63 = vpop.permute.xlu2 %494 }
 0xd9b   :  { %1233 = vmatmul.msk.f32.vlgmr.msra.gmra.mxu1 %vm116_vm5, %v495_v63  ;;  %1242 = vmatmul.msk.f32.gmra.mxu3 %vm116_vm5, %v495_v63 }
 0xd9c   :  { %815 = vmatpush.msra.mxu1 %v1607_v59 }
 0xd9e   :  { %816 = vmatpush.msra.mxu1 %v1612_v60 }
 0xda0   :  { %817 = vmatpush.msra.mxu1 %v1619_v61 }
 0xda2   :  { %818 = vmatpush.msra.mxu1 %v1626_v62 }
 0xda3   :  { %693 = vmatmul.f32.vlgmr.msrb.gmra.mxu1 %v1396_v7  ;;  %v653_v7 = vpop.f32.mrf.mxu3 }
 0xda4   :  { %941 = vmatpush.msrb.mxu1 %v1607_v59  ;;  %v654_v10 = vadd.f32 %v1648_v9, %v653_v7 }
 0xda6   :  { %942 = vmatpush.msrb.mxu1 %v1612_v60 }
 0xda8   :  { %943 = vmatpush.msrb.mxu1 %v1619_v61 }
 0xdaa   :  { %944 = vmatpush.msrb.mxu1 %v1626_v62 }
 0xdab   :  { %v656_v56 = vpop.f32.mrf.mxu3 }
 0xdac   :  { %v657_v57 = vadd.f32 %v1648_v9, %v656_v56 }
 0xe18   :  { %v515_v3 = vpop.f32.mrf.mxu1 }
 0xe19   :  { %v518_v4 = vadd.f32 %v515_v3, %v111_v1 }
 0xe1b   :  { %1315 = vtanh.f32 %v518_v4  ;;  %v1234_v8 = vmul.f32 -1.442695, %v518_v4 }
 0xe20   :  { %v694_v11 = vpop.f32.mrf.mxu1 }
 0xe21   :  { %v1316_v12 = vpop.eup %1315  ;;  %v697_v13 = vadd.f32 %v694_v11, %v654_v10 }
 0xe22   :  { %541 = vrot.lane.b32.xlu0 %v1316_v12, %s1397_s23 }
 0xe23   :  { %1317 = vtanh.f32 %v697_v13  ;;  %v1245_v15 = vmul.f32 -1.442695, %v697_v13 }
 0xe24   :  { %1319 = vpow2.f32 %v1234_v8 }
 0xe25   :  { %1321 = vpow2.f32 %v1245_v15 }
 0xe29   :  { %v1318_v14 = vpop.eup %1317 }
 0xe2a   :  { %720 = vrot.lane.b32.xlu1 %v1318_v14, %s1397_s23  ;;  %v1320_v16 = vpop.eup %1319 }
 0xe2b   :  { %v522_v17 = vadd.f32 1.0, %v1320_v16  ;;  %v1322_v18 = vpop.eup %1321 }
 0xe2c   :  { %v701_v0 = vadd.f32 1.0, %v1322_v18 }
 0xe2d   :  { %1323 = vrcp.f32 %v522_v17  ;;  %v534_v24 = vand.u32 2147483648, %v522_v17  ;;  %vm528_vm12 = vweird.f32 %v522_v17  ;;  %v532_v25 = vand.u32 2147483647, %v522_v17 }
 0xe2e   :  { %1325 = vrcp.f32 %v701_v0  ;;  %v713_v34 = vand.u32 2147483648, %v701_v0  ;;  %vm707_vm1 = vweird.f32 %v701_v0  ;;  %v711_v35 = vand.u32 2147483647, %v701_v0 }
 0xe2f   :  { %v535_v28 = vor.u32 1.1754944e-38, %v534_v24  ;;  %vm533_vm14 = vcmp.eq.f32.partialorder %v532_v25, 8.507059e+37  ;;  %v659_v24 = vpop.f32.mrf.mxu3 }
 0xe30   :  { %v714_v37 = vor.u32 1.1754944e-38, %v713_v34  ;;  %vm712_vm3 = vcmp.eq.f32.partialorder %v711_v35, 8.507059e+37  ;;  %v660_v25 = vadd.f32 %v1648_v9, %v659_v24 }
 0xe33   :  { %v1324_v2 = vpop.eup %1323 }
 0xe34   :  { %v524_v19 = vmul.f32 %v1324_v2, %v522_v17  ;;  %v1326_v20 = vpop.eup %1325  ;;  %vm529_vm11 = vweird.f32 %v1324_v2 }
 0xe35   :  { %v703_v21 = vmul.f32 %v1326_v20, %v701_v0  ;;  %vm530_vm13 = vmor %vm528_vm12, %vm529_vm11  ;;  %vm708_vm15 = vweird.f32 %v1326_v20 }
 0xe36   :  { %v525_v5 = vsub.f32 1.0, %v524_v19  ;;  %vm709_vm2 = vmor %vm707_vm1, %vm708_vm15 }
 0xe37   :  { %v704_v23 = vsub.f32 1.0, %v703_v21 }
 0xe38   :  { %v526_v6 = vmul.f32 %v1324_v2, %v525_v5 }
 0xe39   :  { %v705_v27 = vmul.f32 %v1326_v20, %v704_v23 }
 0xe3a   :  { %v527_v22 = vadd.f32 %v1324_v2, %v526_v6 }
 0xe3b   :  { %v706_v32 = vadd.f32 %v1326_v20, %v705_v27 }
 0xe3c   :  { %v531_v26 = vsel %vm530_vm13, %v1324_v2, %v527_v22 }
 0xe3d   :  { %v536_v30 = vsel %vm533_vm14, %v535_v28, %v531_v26  ;;  %v710_v36 = vsel %vm709_vm2, %v1326_v20, %v706_v32 }
 0xe3e   :  { %v715_v39 = vsel %vm712_vm3, %v714_v37, %v710_v36  ;;  %v539_v41 = vmul.f32 %v536_v30, %v1599_v55 }
 0xe3f   :  { %v718_v45 = vmul.f32 0.0, %v715_v39 }
 0xe94   :  { %v542_v29 = vpop.permute.xlu0 %541 }
 0xe95   :  { %v544_v31 = vmul.f32 %v542_v29, %v536_v30 }
 0xe97   :  { %546 = vrot.lane.b32.xlu2 %v544_v31, %s1398_s24 }
 0xe9c   :  { %v721_v38 = vpop.permute.xlu1 %720 }
 0xe9d   :  { %v723_v40 = vmul.f32 %v721_v38, %v715_v39 }
 0xe9f   :  { %725 = vrot.lane.b32.xlu0 %v723_v40, %s1398_s24 }
 0xef1   :  { %v547_v42 = vpop.permute.xlu2 %546 }
 0xef2   :  { %v1656_v43 = vadd.f32 %v547_v42, %v539_v41 }
 0xef4   :  { %1327 = vtanh.f32 %v1656_v43 }
 0xefa   :  { %v1328_v44 = vpop.eup %1327 }
 0xefb   :  { %552 = vrot.lane.b32.xlu1 %v1328_v44, %s1397_s23 }
 0xf11   :  { %v726_v46 = vpop.permute.xlu0 %725 }
 0xf12   :  { %v728_v47 = vadd.f32 %v726_v46, %v718_v45 }
 0xf14   :  { %1329 = vtanh.f32 %v728_v47 }
 0xf1a   :  { %v1330_v48 = vpop.eup %1329 }
 0xf1b   :  { %731 = vrot.lane.b32.xlu2 %v1330_v48, %s1397_s23 }
 0xf6d   :  { %v553_v49 = vpop.permute.xlu1 %552 }
 0xf6e   :  { %v555_v50 = vmul.f32 %v553_v49, %v536_v30 }
 0xf70   :  { %557 = vrot.lane.b32.xlu0 %v555_v50, %s1398_s24 }
 0xf75   :  { %v732_v51 = vpop.permute.xlu2 %731 }
 0xf76   :  { %v734_v52 = vmul.f32 %v732_v51, %v715_v39 }
 0xf78   :  { %736 = vrot.lane.b32.xlu1 %v734_v52, %s1398_s24 }
 0xfe2   :  { %v558_v53 = vpop.permute.xlu0 %557 }
 0xfe3   :  { %1235 = vmatmul.msk.f32.vlgmr.msrb.gmra.mxu2 %vm116_vm5, %v558_v53  ;;  %1243 = vmatmul.msk.f32.gmra.mxu3 %vm116_vm5, %v558_v53  ;;  %v662_v53 = vpop.f32.mrf.mxu3 }
 0xfe4   :  { %878 = vmatpush.msrb.mxu2 %v1607_v59 }
 0xfe6   :  { %879 = vmatpush.msrb.mxu2 %v1612_v60 }
 0xfe8   :  { %880 = vmatpush.msrb.mxu2 %v1619_v61 }
 0xfea   :  { %v737_v54 = vpop.permute.xlu1 %736  ;;  %881 = vmatpush.msrb.mxu2 %v1626_v62 }
 0xfeb   :  { %1246 = vmatmul.msk.f32.vlgmr.msra.gmra.mxu2 %vm116_vm5, %v737_v54  ;;  %v663_v54 = vadd.f32 %v1648_v9, %v662_v53 }
 0xfec   :  { %1004 = vmatpush.msra.mxu2 %v1607_v59 }
 0xfee   :  { %1005 = vmatpush.msra.mxu2 %v1612_v60 }
 0xff0   :  { %1006 = vmatpush.msra.mxu2 %v1619_v61 }
 0xff2   :  { %1007 = vmatpush.msra.mxu2 %v1626_v62 }
0x1066   :  { %v1674_v55 = vpop.f32.mrf.mxu2 }
0x106e   :  { %v757_v58 = vpop.f32.mrf.mxu2 }
0x106f   :  { %v760_v63 = vadd.f32 %v757_v58, %v657_v57 }
0x1071   :  { %1331 = vtanh.f32 %v760_v63  ;;  %v1247_v3 = vmul.f32 -1.442695, %v760_v63 }
0x1073   :  { %1333 = vpow2.f32 %v1247_v3 }
0x1077   :  { %v1332_v1 = vpop.eup %1331 }
0x1078   :  { %783 = vrot.lane.b32.xlu2 %v1332_v1, %s1397_s23 }
0x1079   :  { %v1334_v4 = vpop.eup %1333 }
0x107a   :  { %v764_v7 = vadd.f32 1.0, %v1334_v4 }
0x107c   :  { %1335 = vrcp.f32 %v764_v7  ;;  %v776_v8 = vand.u32 2147483648, %v764_v7  ;;  %vm770_vm6 = vweird.f32 %v764_v7  ;;  %v774_v15 = vand.u32 2147483647, %v764_v7 }
0x107e   :  { %v777_v17 = vor.u32 1.1754944e-38, %v776_v8  ;;  %vm775_vm0 = vcmp.eq.f32.partialorder %v774_v15, 8.507059e+37 }
0x1082   :  { %v1336_v10 = vpop.eup %1335 }
0x1083   :  { %v766_v11 = vmul.f32 %v1336_v10, %v764_v7  ;;  %vm771_vm4 = vweird.f32 %v1336_v10 }
0x1084   :  { %vm772_vm7 = vmor %vm770_vm6, %vm771_vm4 }
0x1085   :  { %v767_v12 = vsub.f32 1.0, %v766_v11 }
0x1087   :  { %v768_v13 = vmul.f32 %v1336_v10, %v767_v12 }
0x1089   :  { %v769_v14 = vadd.f32 %v1336_v10, %v768_v13 }
0x108b   :  { %v773_v16 = vsel %vm772_vm7, %v1336_v10, %v769_v14 }
0x108c   :  { %v778_v0 = vsel %vm775_vm0, %v777_v17, %v773_v16 }
0x108d   :  { %v781_v19 = vmul.f32 %v778_v0, %v728_v47 }
0x10d2   :  { %v784_v18 = vpop.permute.xlu2 %783 }
0x10d3   :  { %v786_v2 = vmul.f32 %v784_v18, %v778_v0 }
0x10d5   :  { %788 = vrot.lane.b32.xlu0 %v786_v2, %s1398_s24 }
0x1147   :  { %v789_v5 = vpop.permute.xlu0 %788 }
0x1148   :  { %v791_v20 = vadd.f32 %v789_v5, %v781_v19  ;;  %v665_v5 = vpop.f32.mrf.mxu3 }
0x114a   :  { %1337 = vtanh.f32 %v791_v20 }
0x1150   :  { %v1338_v6 = vpop.eup %1337 }
0x1151   :  { %794 = vrot.lane.b32.xlu1 %v1338_v6, %s1397_s23 }
0x11c3   :  { %v795_v21 = vpop.permute.xlu1 %794 }
0x11c4   :  { %v797_v22 = vmul.f32 %v795_v21, %v778_v0 }
0x11c6   :  { %799 = vrot.lane.b32.xlu2 %v797_v22, %s1398_s24 }
0x1220   :  { %v800_v23 = vpop.permute.xlu2 %799 }
0x1221   :  { %1248 = vmatmul.msk.f32.vlgmr.msra.gmra.mxu1 %vm116_vm5, %v800_v23 }
0x1222   :  { %1067 = vmatpush.msra.mxu1 %v1607_v59 }
0x1224   :  { %1068 = vmatpush.msra.mxu1 %v1612_v60 }
0x1226   :  { %1069 = vmatpush.msra.mxu1 %v1619_v61 }
0x1228   :  { %1070 = vmatpush.msra.mxu1 %v1626_v62 }
0x129e   :  { %v820_v26 = vpop.f32.mrf.mxu1 }
0x129f   :  { %v823_v27 = vadd.f32 %v820_v26, %v660_v25 }
0x12a1   :  { %1339 = vtanh.f32 %v823_v27  ;;  %v1249_v29 = vmul.f32 -1.442695, %v823_v27 }
0x12a3   :  { %1341 = vpow2.f32 %v1249_v29 }
0x12a7   :  { %v1340_v28 = vpop.eup %1339 }
0x12a8   :  { %846 = vrot.lane.b32.xlu0 %v1340_v28, %s1397_s23 }
0x12a9   :  { %v1342_v30 = vpop.eup %1341 }
0x12aa   :  { %v827_v31 = vadd.f32 1.0, %v1342_v30 }
0x12ac   :  { %1343 = vrcp.f32 %v827_v31  ;;  %v839_v38 = vand.u32 2147483648, %v827_v31  ;;  %vm833_vm9 = vweird.f32 %v827_v31  ;;  %v837_v39 = vand.u32 2147483647, %v827_v31 }
0x12ae   :  { %v840_v41 = vor.u32 1.1754944e-38, %v839_v38  ;;  %vm838_vm11 = vcmp.eq.f32.partialorder %v837_v39, 8.507059e+37 }
0x12b2   :  { %v1344_v32 = vpop.eup %1343 }
0x12b3   :  { %v829_v34 = vmul.f32 %v1344_v32, %v827_v31  ;;  %vm834_vm8 = vweird.f32 %v1344_v32 }
0x12b4   :  { %vm835_vm10 = vmor %vm833_vm9, %vm834_vm8 }
0x12b5   :  { %v830_v35 = vsub.f32 1.0, %v829_v34 }
0x12b7   :  { %v831_v36 = vmul.f32 %v1344_v32, %v830_v35 }
0x12b9   :  { %v832_v37 = vadd.f32 %v1344_v32, %v831_v36 }
0x12bb   :  { %v836_v40 = vsel %vm835_vm10, %v1344_v32, %v832_v37 }
0x12bc   :  { %v841_v44 = vsel %vm838_vm11, %v840_v41, %v836_v40 }
0x12bd   :  { %v844_v46 = vmul.f32 %v841_v44, %v791_v20  ;;  %v666_v20 = vadd.f32 %v1648_v9, %v665_v5 }
0x131a   :  { %v847_v42 = vpop.permute.xlu0 %846 }
0x131b   :  { %v849_v45 = vmul.f32 %v847_v42, %v841_v44 }
0x131d   :  { %851 = vrot.lane.b32.xlu1 %v849_v45, %s1398_s24 }
0x138f   :  { %v852_v47 = vpop.permute.xlu1 %851 }
0x1390   :  { %v854_v48 = vadd.f32 %v852_v47, %v844_v46  ;;  %v668_v47 = vpop.f32.mrf.mxu3 }
0x1392   :  { %1345 = vtanh.f32 %v854_v48 }
0x1398   :  { %v1346_v49 = vpop.eup %1345 }
0x1399   :  { %857 = vrot.lane.b32.xlu2 %v1346_v49, %s1397_s23 }
0x13f3   :  { %v858_v50 = vpop.permute.xlu2 %857 }
0x13f4   :  { %v860_v51 = vmul.f32 %v858_v50, %v841_v44 }
0x13f6   :  { %862 = vrot.lane.b32.xlu0 %v860_v51, %s1398_s24 }
0x1468   :  { %v863_v52 = vpop.permute.xlu0 %862 }
0x1469   :  { %1250 = vmatmul.msk.f32.vlgmr.msrb.gmra.mxu2 %vm116_vm5, %v863_v52 }
0x146a   :  { %1130 = vmatpush.msrb.mxu2 %v1607_v59 }
0x146c   :  { %1131 = vmatpush.msrb.mxu2 %v1612_v60 }
0x146e   :  { %1132 = vmatpush.msrb.mxu2 %v1619_v61 }
0x1470   :  { %1133 = vmatpush.msrb.mxu2 %v1626_v62 }
0x14ec   :  { %v883_v56 = vpop.f32.mrf.mxu2 }
0x14ed   :  { %v886_v57 = vadd.f32 %v883_v56, %v663_v54 }
0x14ef   :  { %1347 = vtanh.f32 %v886_v57  ;;  %v1251_v63 = vmul.f32 -1.442695, %v886_v57 }
0x14f1   :  { %1349 = vpow2.f32 %v1251_v63 }
0x14f5   :  { %v1348_v58 = vpop.eup %1347 }
0x14f6   :  { %909 = vrot.lane.b32.xlu1 %v1348_v58, %s1397_s23 }
0x14f7   :  { %v1350_v1 = vpop.eup %1349 }
0x14f8   :  { %v890_v3 = vadd.f32 1.0, %v1350_v1 }
0x14fa   :  { %1351 = vrcp.f32 %v890_v3  ;;  %v902_v62 = vand.u32 2147483648, %v890_v3  ;;  %vm896_vm13 = vweird.f32 %v890_v3  ;;  %v900_v10 = vand.u32 2147483647, %v890_v3 }
0x14fc   :  { %v903_v12 = vor.u32 1.1754944e-38, %v902_v62  ;;  %vm901_vm15 = vcmp.eq.f32.partialorder %v900_v10, 8.507059e+37 }
0x1500   :  { %v1352_v59 = vpop.eup %1351 }
0x1501   :  { %v892_v60 = vmul.f32 %v1352_v59, %v890_v3  ;;  %vm897_vm12 = vweird.f32 %v1352_v59 }
0x1502   :  { %vm898_vm14 = vmor %vm896_vm13, %vm897_vm12 }
0x1503   :  { %v893_v4 = vsub.f32 1.0, %v892_v60 }
0x1505   :  { %v894_v61 = vmul.f32 %v1352_v59, %v893_v4  ;;  %v1395_v4 = vld [vmem:[%s1762_s3] ss:$0 sm:$0xff] }
0x1507   :  { %v895_v7 = vadd.f32 %v1352_v59, %v894_v61  ;;  %v114_v61 = vadd.f32 %v1395_v4, %v1594_v33 }
0x1509   :  { %v899_v11 = vsel %vm898_vm14, %v1352_v59, %v895_v7  ;;  %v581_v62 = vadd.f32 %v1674_v55, %v114_v61 }
0x150a   :  { %v904_v14 = vsel %vm901_vm15, %v903_v12, %v899_v11 }
0x150b   :  { %v907_v15 = vmul.f32 %v904_v14, %v854_v48  ;;  %v669_v48 = vadd.f32 %v1648_v9, %v668_v47 }
0x1568   :  { %v910_v13 = vpop.permute.xlu1 %909 }
0x1569   :  { %v912_v8 = vmul.f32 %v910_v13, %v904_v14 }
0x156b   :  { %914 = vrot.lane.b32.xlu2 %v912_v8, %s1398_s24 }
0x15c5   :  { %v915_v16 = vpop.permute.xlu2 %914 }
0x15c6   :  { %v917_v17 = vadd.f32 %v915_v16, %v907_v15  ;;  %v1236_v16 = vmul.f32 -1.442695, %v581_v62 }
0x15c8   :  { %1353 = vtanh.f32 %v917_v17 }
0x15ce   :  { %v1354_v18 = vpop.eup %1353 }
0x15cf   :  { %920 = vrot.lane.b32.xlu0 %v1354_v18, %s1397_s23 }
0x1641   :  { %v921_v0 = vpop.permute.xlu0 %920 }
0x1642   :  { %v923_v2 = vmul.f32 %v921_v0, %v904_v14 }
0x1644   :  { %925 = vrot.lane.b32.xlu1 %v923_v2, %s1398_s24 }
0x16b6   :  { %v926_v19 = vpop.permute.xlu1 %925 }
0x16b7   :  { %1252 = vmatmul.msk.f32.vlgmr.msrb.gmra.mxu1 %vm116_vm5, %v926_v19 }
0x1734   :  { %v946_v6 = vpop.f32.mrf.mxu1 }
0x1735   :  { %v949_v21 = vadd.f32 %v946_v6, %v666_v20 }
0x1737   :  { %1355 = vtanh.f32 %v949_v21  ;;  %v1253_v23 = vmul.f32 -1.442695, %v949_v21 }
0x1739   :  { %1357 = vpow2.f32 %v1253_v23 }
0x173d   :  { %v1356_v22 = vpop.eup %1355 }
0x173e   :  { %972 = vrot.lane.b32.xlu2 %v1356_v22, %s1397_s23 }
0x173f   :  { %v1358_v24 = vpop.eup %1357 }
0x1740   :  { %v953_v25 = vadd.f32 1.0, %v1358_v24 }
0x1742   :  { %1359 = vrcp.f32 %v953_v25  ;;  %v965_v31 = vand.u32 2147483648, %v953_v25  ;;  %vm959_vm2 = vweird.f32 %v953_v25  ;;  %v963_v32 = vand.u32 2147483647, %v953_v25 }
0x1744   :  { %v966_v35 = vor.u32 1.1754944e-38, %v965_v31  ;;  %vm964_vm4 = vcmp.eq.f32.partialorder %v963_v32, 8.507059e+37 }
0x1748   :  { %v1360_v26 = vpop.eup %1359 }
0x1749   :  { %v955_v27 = vmul.f32 %v1360_v26, %v953_v25  ;;  %vm960_vm1 = vweird.f32 %v1360_v26 }
0x174a   :  { %vm961_vm3 = vmor %vm959_vm2, %vm960_vm1 }
0x174b   :  { %v956_v28 = vsub.f32 1.0, %v955_v27 }
0x174d   :  { %v957_v29 = vmul.f32 %v1360_v26, %v956_v28 }
0x174f   :  { %v958_v30 = vadd.f32 %v1360_v26, %v957_v29  ;;  %v671_v29 = vpop.f32.mrf.mxu3 }
0x1751   :  { %v962_v34 = vsel %vm961_vm3, %v1360_v26, %v958_v30  ;;  %v672_v30 = vadd.f32 %v1648_v9, %v671_v29 }
0x1752   :  { %v967_v37 = vsel %vm964_vm4, %v966_v35, %v962_v34 }
0x1753   :  { %v970_v39 = vmul.f32 %v967_v37, %v917_v17 }
0x1798   :  { %v973_v36 = vpop.permute.xlu2 %972 }
0x1799   :  { %v975_v38 = vmul.f32 %v973_v36, %v967_v37 }
0x179b   :  { %977 = vrot.lane.b32.xlu0 %v975_v38, %s1398_s24 }
0x180d   :  { %v978_v40 = vpop.permute.xlu0 %977 }
0x180e   :  { %v980_v41 = vadd.f32 %v978_v40, %v970_v39 }
0x1810   :  { %1361 = vtanh.f32 %v980_v41 }
0x1816   :  { %v1362_v42 = vpop.eup %1361 }
0x1817   :  { %983 = vrot.lane.b32.xlu1 %v1362_v42, %s1397_s23 }
0x1889   :  { %v984_v44 = vpop.permute.xlu1 %983 }
0x188a   :  { %v986_v45 = vmul.f32 %v984_v44, %v967_v37 }
0x188c   :  { %988 = vrot.lane.b32.xlu2 %v986_v45, %s1398_s24 }
0x18e6   :  { %v989_v46 = vpop.permute.xlu2 %988 }
0x18e7   :  { %1254 = vmatmul.msk.f32.vlgmr.msra.gmra.mxu2 %vm116_vm5, %v989_v46 }
0x196a   :  { %v1009_v49 = vpop.f32.mrf.mxu2 }
0x196b   :  { %v1012_v50 = vadd.f32 %v1009_v49, %v669_v48 }
0x196d   :  { %1363 = vtanh.f32 %v1012_v50  ;;  %v1255_v52 = vmul.f32 -1.442695, %v1012_v50 }
0x196f   :  { %1365 = vpow2.f32 %v1255_v52 }
0x1973   :  { %v1364_v51 = vpop.eup %1363 }
0x1974   :  { %1035 = vrot.lane.b32.xlu0 %v1364_v51, %s1397_s23 }
0x1975   :  { %v1366_v53 = vpop.eup %1365 }
0x1976   :  { %v1016_v54 = vadd.f32 1.0, %v1366_v53 }
0x1978   :  { %1367 = vrcp.f32 %v1016_v54  ;;  %v1028_v3 = vand.u32 2147483648, %v1016_v54  ;;  %vm1022_vm7 = vweird.f32 %v1016_v54  ;;  %v1026_v59 = vand.u32 2147483647, %v1016_v54 }
0x1979   :  { %1369 = vtanh.f32 %v581_v62 }
0x197a   :  { %v1029_v7 = vor.u32 1.1754944e-38, %v1028_v3  ;;  %vm1027_vm8 = vcmp.eq.f32.partialorder %v1026_v59, 8.507059e+37 }
0x197e   :  { %v1368_v56 = vpop.eup %1367 }
0x197f   :  { %v1018_v57 = vmul.f32 %v1368_v56, %v1016_v54  ;;  %vm1023_vm6 = vweird.f32 %v1368_v56  ;;  %v1370_v13 = vpop.eup %1369 }
0x1980   :  { %vm1024_vm0 = vmor %vm1022_vm7, %vm1023_vm6 }
0x1981   :  { %v1019_v58 = vsub.f32 1.0, %v1018_v57 }
0x1983   :  { %v1020_v63 = vmul.f32 %v1368_v56, %v1019_v58 }
0x1985   :  { %v1021_v1 = vadd.f32 %v1368_v56, %v1020_v63 }
0x1987   :  { %v1025_v60 = vsel %vm1024_vm0, %v1368_v56, %v1021_v1 }
0x1988   :  { %v1030_v11 = vsel %vm1027_vm8, %v1029_v7, %v1025_v60 }
0x1989   :  { %v1033_v14 = vmul.f32 %v1030_v11, %v980_v41 }
0x19e6   :  { %v1036_v10 = vpop.permute.xlu0 %1035 }
0x19e7   :  { %v1038_v12 = vmul.f32 %v1036_v10, %v1030_v11 }
0x19e9   :  { %1040 = vrot.lane.b32.xlu1 %v1038_v12, %s1398_s24 }
0x19f1   :  { %604 = vrot.lane.b32.xlu1 %v1370_v13, %s1397_s23 }
0x1a5b   :  { %v1041_v8 = vpop.permute.xlu1 %1040 }
0x1a5c   :  { %v1717_v15 = vadd.f32 %v1041_v8, %v1033_v14 }
0x1a5e   :  { %1371 = vtanh.f32 %v1717_v15 }
0x1a5f   :  { %1373 = vpow2.f32 %v1236_v16 }
0x1a63   :  { %v605_v25 = vpop.permute.xlu1 %604 }
0x1a64   :  { %v1372_v33 = vpop.eup %1371 }
0x1a65   :  { %1046 = vrot.lane.b32.xlu2 %v1372_v33, %s1397_s23  ;;  %v1374_v55 = vpop.eup %1373 }
0x1a66   :  { %v585_v17 = vadd.f32 1.0, %v1374_v55 }
0x1a68   :  { %1375 = vrcp.f32 %v585_v17  ;;  %v597_v21 = vand.u32 2147483648, %v585_v17  ;;  %vm591_vm10 = vweird.f32 %v585_v17  ;;  %v595_v22 = vand.u32 2147483647, %v585_v17 }
0x1a6a   :  { %v598_v24 = vor.u32 1.1754944e-38, %v597_v21  ;;  %vm596_vm12 = vcmp.eq.f32.partialorder %v595_v22, 8.507059e+37 }
0x1a6e   :  { %v1376_v18 = vpop.eup %1375 }
0x1a6f   :  { %v587_v0 = vmul.f32 %v1376_v18, %v585_v17  ;;  %vm592_vm9 = vweird.f32 %v1376_v18 }
0x1a70   :  { %vm593_vm11 = vmor %vm591_vm10, %vm592_vm9 }
0x1a71   :  { %v588_v2 = vsub.f32 1.0, %v587_v0 }
0x1a73   :  { %v589_v19 = vmul.f32 %v1376_v18, %v588_v2 }
0x1a75   :  { %v590_v20 = vadd.f32 %v1376_v18, %v589_v19 }
0x1a77   :  { %v594_v23 = vsel %vm593_vm11, %v1376_v18, %v590_v20 }
0x1a78   :  { %v599_v26 = vsel %vm596_vm12, %v598_v24, %v594_v23  ;;  %v1179_v23 = vld [vmem:[%s1766_s7 + $0x18] sm:$0xff]  ;;  %v1178_v24 = vld [vmem:[%s1766_s7 + $0x10] sm:$0xff] }
0x1a79   :  { %v607_v27 = vmul.f32 %v605_v25, %v599_v26  ;;  %v602_v35 = vmul.f32 %v599_v26, %v1656_v43  ;;  %1201 = vmatpush.msrb.mxu1 %v1179_v23  ;;  %v1177_v25 = vld [vmem:[%s1766_s7 + $0x8] sm:$0xff] }
0x1a7b   :  { %1202 = vmatpush.msrb.mxu1 %v1178_v24 }
0x1a7d   :  { %1203 = vmatpush.msrb.mxu1 %v1177_v25 }
0x1abf   :  { %v1047_v5 = vpop.permute.xlu2 %1046 }
0x1ac0   :  { %v1049_v6 = vmul.f32 %v1047_v5, %v1030_v11 }
0x1ac2   :  { %1051 = vrot.lane.b32.xlu0 %v1049_v6, %s1398_s24 }
0x1aca   :  { %609 = vrot.lane.b32.xlu0 %v607_v27, %s1398_s24 }
0x1b34   :  { %v1052_v28 = vpop.permute.xlu0 %1051 }
0x1b35   :  { %1256 = vmatmul.msk.f32.vlgmr.msra.gmra.mxu1 %vm116_vm5, %v1052_v28 }
0x1b3c   :  { %v610_v34 = vpop.permute.xlu0 %609 }
0x1b3d   :  { %v612_v36 = vadd.f32 %v610_v34, %v602_v35 }
0x1bb2   :  { %v1072_v31 = vpop.f32.mrf.mxu1 }
0x1bb3   :  { %v1075_v32 = vadd.f32 %v1072_v31, %v672_v30  ;;  %v1266_v30 = vld [vmem:[%s1767_s8] ss:$0 sm:$0xff] }
0x1bb5   :  { %1377 = vtanh.f32 %v1075_v32  ;;  %v1257_v39 = vmul.f32 -1.442695, %v1075_v32 }
0x1bb6   :  { %1379 = vtanh.f32 %v612_v36 }
0x1bb7   :  { %1381 = vpow2.f32 %v1257_v39 }
0x1bbb   :  { %v1378_v37 = vpop.eup %1377 }
0x1bbc   :  { %1098 = vrot.lane.b32.xlu2 %v1378_v37, %s1397_s23  ;;  %v1380_v38 = vpop.eup %1379 }
0x1bbd   :  { %v1382_v40 = vpop.eup %1381 }
0x1bbe   :  { %v1079_v41 = vadd.f32 1.0, %v1382_v40 }
0x1bc0   :  { %1383 = vrcp.f32 %v1079_v41  ;;  %v1091_v43 = vand.u32 2147483648, %v1079_v41  ;;  %vm1085_vm14 = vweird.f32 %v1079_v41  ;;  %v1089_v48 = vand.u32 2147483647, %v1079_v41 }
0x1bc2   :  { %v1092_v50 = vor.u32 1.1754944e-38, %v1091_v43  ;;  %vm1090_vm1 = vcmp.eq.f32.partialorder %v1089_v48, 8.507059e+37 }
0x1bc4   :  { %615 = vrot.lane.b32.xlu2 %v1380_v38, %s1397_s23 }
0x1bc6   :  { %v1384_v42 = vpop.eup %1383 }
0x1bc7   :  { %v1081_v44 = vmul.f32 %v1384_v42, %v1079_v41  ;;  %vm1086_vm13 = vweird.f32 %v1384_v42 }
0x1bc8   :  { %vm1087_vm15 = vmor %vm1085_vm14, %vm1086_vm13 }
0x1bc9   :  { %v1082_v45 = vsub.f32 1.0, %v1081_v44 }
0x1bcb   :  { %v1083_v46 = vmul.f32 %v1384_v42, %v1082_v45 }
0x1bcd   :  { %v1084_v47 = vadd.f32 %v1384_v42, %v1083_v46 }
0x1bcf   :  { %v1088_v49 = vsel %vm1087_vm15, %v1384_v42, %v1084_v47 }
0x1bd0   :  { %v1093_v52 = vsel %vm1090_vm1, %v1092_v50, %v1088_v49 }
0x1bd1   :  { %v1096_v57 = vmul.f32 %v1093_v52, %v1717_v15 }
0x1c16   :  { %v1099_v51 = vpop.permute.xlu2 %1098 }
0x1c17   :  { %v1101_v53 = vmul.f32 %v1099_v51, %v1093_v52 }
0x1c19   :  { %1103 = vrot.lane.b32.xlu1 %v1101_v53, %s1398_s24 }
0x1c1e   :  { %v616_v54 = vpop.permute.xlu2 %615 }
0x1c1f   :  { %v618_v56 = vmul.f32 %v616_v54, %v599_v26  ;;  %v1176_v26 = vld [vmem:[%s1766_s7] sm:$0xff] }
0x1c20   :  { %1204 = vmatpush.msrb.mxu1 %v1176_v26 }
0x1c21   :  { %632 = vrot.lane.b32.xlu1 %v618_v56, %s1398_s24 }
0x1c8b   :  { %v1104_v58 = vpop.permute.xlu1 %1103 }
0x1c8c   :  { %v1106_v63 = vadd.f32 %v1104_v58, %v1096_v57 }
0x1c8e   :  { %1385 = vtanh.f32 %v1106_v63 }
0x1c93   :  { %v633_v1 = vpop.permute.xlu1 %632 }
0x1c94   :  { %v1386_v3 = vpop.eup %1385  ;;  %1244 = vmatmul.msk.f32.gmra.mxu3 %vm116_vm5, %v633_v1 }
0x1c95   :  { %1109 = vrot.lane.b32.xlu0 %v1386_v3, %s1397_s23 }
0x1d07   :  { %v1110_v59 = vpop.permute.xlu0 %1109 }
0x1d08   :  { %v1112_v60 = vmul.f32 %v1110_v59, %v1093_v52 }
0x1d0a   :  { %1114 = vrot.lane.b32.xlu2 %v1112_v60, %s1398_s24 }
0x1d17   :  { %v674_v61 = vpop.f32.mrf.mxu3 }
0x1d18   :  { %v675_v7 = vadd.f32 %v1648_v9, %v674_v61 }
0x1d64   :  { %v1115_v4 = vpop.permute.xlu2 %1114 }
0x1d65   :  { %1258 = vmatmul.msk.f32.vlgmr.msrb.gmra.mxu2 %vm116_vm5, %v1115_v4 }
0x1de8   :  { %v1135_v62 = vpop.f32.mrf.mxu2 }
0x1de9   :  { %v1138_v10 = vadd.f32 %v1135_v62, %v675_v7 }
0x1deb   :  { %1387 = vtanh.f32 %v1138_v10  ;;  %v1259_v12 = vmul.f32 -1.442695, %v1138_v10 }
0x1ded   :  { %1389 = vpow2.f32 %v1259_v12 }
0x1df1   :  { %v1388_v11 = vpop.eup %1387 }
0x1df2   :  { %1161 = vrot.lane.b32.xlu0 %v1388_v11, %s1397_s23 }
0x1df3   :  { %v1390_v13 = vpop.eup %1389 }
0x1df4   :  { %v1142_v14 = vadd.f32 1.0, %v1390_v13 }
0x1df6   :  { %1391 = vrcp.f32 %v1142_v14  ;;  %v1154_v17 = vand.u32 2147483648, %v1142_v14  ;;  %vm1148_vm3 = vweird.f32 %v1142_v14  ;;  %v1152_v9 = vand.u32 2147483647, %v1142_v14 }
0x1df8   :  { %v1155_v0 = vor.u32 1.1754944e-38, %v1154_v17  ;;  %vm1153_vm6 = vcmp.eq.f32.partialorder %v1152_v9, 8.507059e+37 }
0x1dfc   :  { %v1392_v8 = vpop.eup %1391 }
0x1dfd   :  { %v1144_v15 = vmul.f32 %v1392_v8, %v1142_v14  ;;  %vm1149_vm2 = vweird.f32 %v1392_v8 }
0x1dfe   :  { %vm1150_vm4 = vmor %vm1148_vm3, %vm1149_vm2 }
0x1dff   :  { %v1145_v33 = vsub.f32 1.0, %v1144_v15 }
0x1e01   :  { %v1146_v16 = vmul.f32 %v1392_v8, %v1145_v33 }
0x1e03   :  { %v1147_v55 = vadd.f32 %v1392_v8, %v1146_v16 }
0x1e05   :  { %v1151_v18 = vsel %vm1150_vm4, %v1392_v8, %v1147_v55 }
0x1e06   :  { %v1156_v19 = vsel %vm1153_vm6, %v1155_v0, %v1151_v18 }
0x1e07   :  { %v1159_v20 = vmul.f32 %v1156_v19, %v1106_v63 }
0x1e64   :  { %v1162_v2 = vpop.permute.xlu0 %1161 }
0x1e65   :  { %v1164_v5 = vmul.f32 %v1162_v2, %v1156_v19 }
0x1e67   :  { %1166 = vrot.lane.b32.xlu1 %v1164_v5, %s1398_s24 }
0x1ed9   :  { %v1167_v6 = vpop.permute.xlu1 %1166 }
0x1eda   :  { %v1169_v21 = vadd.f32 %v1167_v6, %v1159_v20 }
0x1edc   :  { %1393 = vtanh.f32 %v1169_v21 }
0x1ee2   :  { %v1394_v22 = vpop.eup %1393 }
0x1ee3   :  { %1172 = vrot.lane.b32.xlu2 %v1394_v22, %s1397_s23 }
0x1f3d   :  { %v1173_v27 = vpop.permute.xlu2 %1172 }
0x1f3e   :  { %v1175_v28 = vmul.f32 %v1173_v27, %v1156_v19 }
0x1f40   :  { %1185 = vrot.lane.b32.xlu0 %v1175_v28, %s1398_s24 }
0x1fb2   :  { %v1186_v29 = vpop.permute.xlu0 %1185 }
0x1fb3   :  { %1260 = vmatmul.msk.f32.vlgmr.msrb.gmra.mxu1 %vm116_vm5, %v1186_v29 }
0x2030   :  { %v1206_v31 = vpop.f32.mrf.mxu1 }
0x2031   :  { %v1207_v32 = vadd.f32 %v1266_v30, %v1206_v31 }
0x2033   :  { %1209 = vst [vmem:[%s1768_s9] sm:$0xff] %v1207_v32 }

</bundles_post_ra>
